<compile_context>
chip_gen: v5e
topology: v5e:2x2
jax: 0.10.0
libtpu: 0.0.40
codegen_flags: <defaults>
</compile_context>

<pallas_src>
import math

import jax
import jax.numpy as jnp
from jax.experimental import pallas as pl
from jax.experimental.pallas import tpu as pltpu

LN_EPS = 1e-5  # nn.LayerNorm default


# --------------------------------------------------------------------------- #
# Kernel
# --------------------------------------------------------------------------- #
def _patch_merging_kernel(x_ref, ga_ref, ba_ref, gb_ref, bb_ref,
                          wa_ref, wb_ref, o_ref):
    """Fused LayerNorm(4C) + Linear(4C -> 2C, no bias), split over the two
    row-halves of each 2x2 patch.

    x_ref : (tr, 2, Wo, 2C)   r=0 -> features [x0 | x2], r=1 -> [x1 | x3]
    ga/ba : (1, 2C)           LN gamma/beta for the even-row half (f32)
    gb/bb : (1, 2C)           LN gamma/beta for the odd-row  half (f32)
    wa/wb : (2C, co_p)        reduction-weight rows per half (matmul dtype)
    o_ref : (tr*Wo, co_p)     lane-dense output slab (no in-kernel reshape)
    """
    tr, _, wo, c2 = x_ref.shape
    m = tr * wo

    # Static slice on a non-minor axis (free), then flatten the token dims on
    # the *narrow* input dtype (relayout only when Wo % 8 != 0, and then on
    # bf16 bytes, before the f32 upcast).
    a = x_ref[:, 0].reshape(m, c2).astype(jnp.float32)
    b = x_ref[:, 1].reshape(m, c2).astype(jnp.float32)

    # LayerNorm statistics over the full 4C feature set (both halves jointly).
    # Single-pass variance E[x^2] - mean^2 in f32, clamped at 0.
    inv_n = 1.0 / (2 * c2)
    s1 = jnp.sum(a, axis=-1, keepdims=True) + jnp.sum(b, axis=-1, keepdims=True)
    s2 = (jnp.sum(a * a, axis=-1, keepdims=True)
          + jnp.sum(b * b, axis=-1, keepdims=True))
    mean = s1 * inv_n
    var = jnp.maximum(s2 * inv_n - mean * mean, 0.0)
    rstd = jax.lax.rsqrt(var + LN_EPS)

    an = ((a - mean) * rstd * ga_ref[...].astype(jnp.float32)
          + ba_ref[...].astype(jnp.float32))
    bn = ((b - mean) * rstd * gb_ref[...].astype(jnp.float32)
          + bb_ref[...].astype(jnp.float32))

    # Split-K matmul on the MXU (kept split: lane-concat of an/bn would be a
    # real VMEM copy; the f32 add between the two dots rides a free VPU slot).
    mm_dtype = wa_ref.dtype
    y = jnp.dot(an.astype(mm_dtype), wa_ref[...],
                preferred_element_type=jnp.float32)
    y = y + jnp.dot(bn.astype(mm_dtype), wb_ref[...],
                    preferred_element_type=jnp.float32)
    o_ref[...] = y.astype(o_ref.dtype)


# --------------------------------------------------------------------------- #
# Wrapper helpers
# --------------------------------------------------------------------------- #
def _vmem_budget_bytes():
    """~3/4 of per-core VMEM (48 MiB on v7x, 96 MiB on v5e/v6e)."""
    try:
        cap = int(pltpu.get_tpu_info().vmem_capacity_bytes)
    except Exception:  # no device info available -> conservative v7x-sized cap
        cap = 64 * 1024 * 1024
    return min((cap * 3) // 4, 112 * 1024 * 1024)


def _pick_row_tile(n_rows, wo, row_cap, target_tokens):
    """Rows of 2x2 patches per grid step.

    Constraints / preferences:
      * tr * wo stays a multiple of 8 (sublane-clean output blocks) unless the
        single block equals the whole array,
      * ~target_tokens tokens per step, bounded by the VMEM row budget,
      * >= 2 grid steps, preferably an even count (v7x has 2 TensorCores).
    """
    factor = 8 // math.gcd(wo, 8)                 # tr % factor == 0 -> tr*wo % 8 == 0
    tr = max(1, min(n_rows, max(1, target_tokens // max(wo, 1)), max(1, row_cap)))
    if tr >= n_rows:
        if n_rows < 2 * factor:
            return n_rows                         # single step, block == full array
        tr = -(-n_rows // 2)                      # split for v7x's 2 TensorCores
    tr = max(factor, -(-tr // factor) * factor)   # round up to a multiple of factor
    if tr >= n_rows:
        return n_rows
    for _ in range(8):                            # prefer an even step count
        steps = -(-n_rows // tr)
        if steps % 2 == 0 or tr <= factor:
            break
        tr = max(factor, tr - factor)
    return tr


def prepare_patch_merging_params(params, *, mm_dtype=jnp.bfloat16):
    """One-time parameter preprocessing (hoisted out of the per-call forward).

    params: {'reduction_weight': (2C, 4C), 'norm_weight': (4C,), 'norm_bias': (4C,)}
    Permutes gamma/beta and the weight rows from PyTorch's [x0,x1,x2,x3]
    feature order into the row-half order [x0,x2 | x1,x3] used by the kernel,
    pads the output features to a lane-dense width and casts weights to
    mm_dtype.
    """
    gamma = jnp.asarray(params["norm_weight"], jnp.float32)
    beta = jnp.asarray(params["norm_bias"], jnp.float32)
    w = jnp.asarray(params["reduction_weight"])
    c4 = gamma.shape[0]
    assert c4 % 4 == 0 and w.shape[1] == c4, "inconsistent PatchMerging params"
    C = c4 // 4
    c2 = 2 * C
    co = w.shape[0]
    co_p = co if co % 128 == 0 else ((co + 127) // 128) * 128

    ga = jnp.concatenate([gamma[0:C], gamma[2 * C:3 * C]]).reshape(1, c2)
    gb = jnp.concatenate([gamma[C:2 * C], gamma[3 * C:4 * C]]).reshape(1, c2)
    ba = jnp.concatenate([beta[0:C], beta[2 * C:3 * C]]).reshape(1, c2)
    bb = jnp.concatenate([beta[C:2 * C], beta[3 * C:4 * C]]).reshape(1, c2)

    w_t = w.T.astype(jnp.float32)                         # (4C, co); y = x4c @ w_t
    wa = jnp.concatenate([w_t[0:C], w_t[2 * C:3 * C]], axis=0)     # (2C, co)
    wb = jnp.concatenate([w_t[C:2 * C], w_t[3 * C:4 * C]], axis=0)
    if co_p != co:
        wa = jnp.pad(wa, ((0, 0), (0, co_p - co)))
        wb = jnp.pad(wb, ((0, 0), (0, co_p - co)))
    return {
        "dim": C, "out_dim": co, "out_dim_padded": co_p,
        "ga": ga, "gb": gb, "ba": ba, "bb": bb,
        "wa": wa.astype(mm_dtype), "wb": wb.astype(mm_dtype),
    }


def patch_merging_forward(x, input_size, params, *, target_tokens=2048,
                          mm_dtype=jnp.bfloat16, keep_padded_output=False):
    """Pallas-backed PatchMerging.forward.

    Args:
      x: (B, H*W, C) tokens (bf16 recommended; the output keeps x.dtype).
      input_size: (H, W).
      params: raw PyTorch-style params or the output of
        prepare_patch_merging_params (preferred: prepare once per module).
      keep_padded_output: if True and 2C is not a multiple of 128, return the
        lane-padded (..., co_p) layout and skip the extra post-call slice.
    Returns:
      (y, output_size) with y: (B, ceil(H/2)*ceil(W/2), 2C)  [or (..., co_p)].
    """
    if "wa" not in params:                      # raw params -> prepare on the fly
        params = prepare_patch_merging_params(params, mm_dtype=mm_dtype)
    p = params
    C = p["dim"]
    c2 = 2 * C
    co = p["out_dim"]
    co_p = p["out_dim_padded"]

    H, W = input_size
    B, L, Cx = x.shape
    assert L == H * W, "input feature has wrong size"
    assert Cx == C, "channel mismatch between x and params"

    x4 = x.reshape(B, H, W, C)
    if (H % 2 == 1) or (W % 2 == 1):
        # TODO(synk): the odd-H/W zero pad (F.pad equivalent) is a one-off HBM
        # copy in the wrapper; it is not fused into the kernel.
        x4 = jnp.pad(x4, ((0, 0), (0, H % 2), (0, W % 2), (0, 0)))
    Hp, Wp = x4.shape[1], x4.shape[2]
    Ho, Wo = Hp // 2, Wp // 2
    output_size = (Ho, Wo)

    # Free reshape (metadata only): row-half r=0 of each 2x2 patch carries the
    # [x0 | x2] features, r=1 carries [x1 | x3].
    n_rows = B * Ho
    n_tokens = n_rows * Wo
    xr = x4.reshape(n_rows, 2, Wo, c2)

    # --- tiling bounded by a real VMEM budget ------------------------------ #
    vmem_budget = _vmem_budget_bytes()
    x_bytes = jnp.dtype(x.dtype).itemsize
    w_bytes = jnp.dtype(p["wa"].dtype).itemsize
    weight_bytes = 2 * c2 * co_p * w_bytes + 4 * c2 * 4   # wa+wb + 4 LN vectors
    per_token_bytes = (2 * 2 * c2 * x_bytes                # double-buffered input
                       + 2 * co_p * x_bytes                # double-buffered output
                       + (4 * c2 + co_p) * 4               # f32 temps a,b,an,bn,y
                       + 2 * c2 * w_bytes)                 # matmul-dtype operands
    row_cap = max(1, int((vmem_budget - 2 * weight_bytes - (4 << 20))
                         // (per_token_bytes * Wo)))
    tr = _pick_row_tile(n_rows, Wo, row_cap, target_tokens)
    n_steps = pl.cdiv(n_rows, tr)               # ragged last block allowed

    # --- pallas_call -------------------------------------------------------- #
    def _call(single_buffer_consts):
        def const_spec(shape):
            idx = lambda i: (0,) * len(shape)
            if single_buffer_consts:
                # Constant-index blocks are fetched once; a single buffer avoids
                # wasting the default second pipeline buffer (matters on v7x's
                # 64 MiB VMEM for large reduction weights).
                return pl.BlockSpec(shape, idx, pipeline_mode=pl.Buffered(1))
            return pl.BlockSpec(shape, idx)

        in_specs = [
            pl.BlockSpec((tr, 2, Wo, c2), lambda i: (i, 0, 0, 0)),
            const_spec((1, c2)), const_spec((1, c2)),
            const_spec((1, c2)), const_spec((1, c2)),
            const_spec((c2, co_p)), const_spec((c2, co_p)),
        ]
        return pl.pallas_call(
            _patch_merging_kernel,
            out_shape=jax.ShapeDtypeStruct((n_tokens, co_p), x.dtype),
            grid=(n_steps,),
            in_specs=in_specs,
            out_specs=pl.BlockSpec((tr * Wo, co_p), lambda i: (i, 0)),
            compiler_params=pltpu.CompilerParams(
                dimension_semantics=("parallel",),
                vmem_limit_bytes=int(vmem_budget),
            ),
        )(xr, p["ga"], p["ba"], p["gb"], p["bb"], p["wa"], p["wb"])

    try:
        y2 = _call(True)
    except Exception:
        # Older jax without BlockSpec(pipeline_mode=...) / Buffered(1):
        # fall back to default double-buffered constant blocks.
        y2 = _call(False)

    y = y2.reshape(B, Ho * Wo, co_p)
    if co_p != co and not keep_padded_output:
        y = y[:, :, :co]
    return y, output_size


# --------------------------------------------------------------------------- #
# Pure-JAX reference + self-test
# --------------------------------------------------------------------------- #
def _reference_forward(x, input_size, params):
    """Pure-JAX (f32) reference of the PyTorch module."""
    H, W = input_size
    B, L, C = x.shape
    xr = x.reshape(B, H, W, C)
    if (H % 2 == 1) or (W % 2 == 1):
        xr = jnp.pad(xr, ((0, 0), (0, H % 2), (0, W % 2), (0, 0)))
    x0 = xr[:, 0::2, 0::2, :]
    x1 = xr[:, 1::2, 0::2, :]
    x2 = xr[:, 0::2, 1::2, :]
    x3 = xr[:, 1::2, 1::2, :]
    xc = jnp.concatenate([x0, x1, x2, x3], -1)
    xc = xc.reshape(B, -1, 4 * C).astype(jnp.float32)
    mean = jnp.mean(xc, axis=-1, keepdims=True)
    var = jnp.mean((xc - mean) ** 2, axis=-1, keepdims=True)
    xn = (xc - mean) / jnp.sqrt(var + LN_EPS)
    xn = xn * params["norm_weight"] + params["norm_bias"]
    return jnp.einsum("bld,od->blo", xn, params["reduction_weight"])


def _run_case(B, C, H, W, key, dtype):
    kx, kw, kg, kb = jax.random.split(key, 4)
    x = jax.random.normal(kx, (B, H * W, C), dtype=jnp.float32).astype(dtype)
    raw = {
        "reduction_weight": jax.random.normal(kw, (2 * C, 4 * C), jnp.float32) * 0.05,
        "norm_weight": 1.0 + 0.01 * jax.random.normal(kg, (4 * C,), jnp.float32),
        "norm_bias": 0.01 * jax.random.normal(kb, (4 * C,), jnp.float32),
    }
    prepared = prepare_patch_merging_params(raw)      # one-time prep (hoisted)
    y, out_size = patch_merging_forward(x, (H, W), prepared)
    y = jax.block_until_ready(y)

    y_ref = _reference_forward(x, (H, W), raw)
    Ho, Wo = (H + H % 2) // 2, (W + W % 2) // 2
    assert y.shape == (B, Ho * Wo, 2 * C), y.shape
    assert out_size == (Ho, Wo), out_size
    # bf16 MXU matmul / bf16 I-O vs f32 reference -> loosened tolerance.
    err = float(jnp.max(jnp.abs(y.astype(jnp.float32) - y_ref)))
    assert jnp.allclose(y.astype(jnp.float32), y_ref, atol=3e-2, rtol=3e-2), err


if __name__ == "__main__":
    key = jax.random.PRNGKey(0)
    k1, k2, k3 = jax.random.split(key, 3)
    # Even spatial dims, f32 activations (no pad path): B=2, C=4, H=W=16.
    _run_case(2, 4, 16, 16, k1, jnp.float32)
    # Odd spatial dims, bf16 activations (exercises the F.pad-equivalent path).
    _run_case(2, 4, 7, 7, k2, jnp.bfloat16)
    # Non-dividing row count -> ragged last grid block (masked OOB writes).
    _run_case(3, 4, 10, 12, k3, jnp.bfloat16)
    print("KERNEL_OK")
</pallas_src>

<mosaic_0001>
module attributes {stable_mosaic.version = 11 : i64} {
  func.func @_patch_merging_kernel(%arg0: i32, %arg1: memref<8x2x8x8xf32, #tpu.memory_space<vmem>>, %arg2: memref<1x8xf32, #tpu.memory_space<vmem>>, %arg3: memref<1x8xf32, #tpu.memory_space<vmem>>, %arg4: memref<1x8xf32, #tpu.memory_space<vmem>>, %arg5: memref<1x8xf32, #tpu.memory_space<vmem>>, %arg6: memref<8x128xbf16, #tpu.memory_space<vmem>>, %arg7: memref<8x128xbf16, #tpu.memory_space<vmem>>, %arg8: memref<64x128xf32, #tpu.memory_space<vmem>>) attributes {dimension_semantics = [#tpu.dimension_semantics<parallel>], iteration_bounds = array<i64: 2>, scalar_prefetch = 0 : i64, scratch_operands = 0 : i64, tpu.core_type = #tpu.core_type<tc>, window_params = [{transform_indices = @transform_0, window_bounds = array<i64: 8, 2, 8, 8>}, {pipeline_mode = #tpu.pipeline_mode<synchronous>, transform_indices = @transform_1, window_bounds = array<i64: 1, 8>}, {pipeline_mode = #tpu.pipeline_mode<synchronous>, transform_indices = @transform_2, window_bounds = array<i64: 1, 8>}, {pipeline_mode = #tpu.pipeline_mode<synchronous>, transform_indices = @transform_3, window_bounds = array<i64: 1, 8>}, {pipeline_mode = #tpu.pipeline_mode<synchronous>, transform_indices = @transform_4, window_bounds = array<i64: 1, 8>}, {pipeline_mode = #tpu.pipeline_mode<synchronous>, transform_indices = @transform_5, window_bounds = array<i64: 8, 128>}, {pipeline_mode = #tpu.pipeline_mode<synchronous>, transform_indices = @transform_6, window_bounds = array<i64: 8, 128>}, {transform_indices = @transform_7, window_bounds = array<i64: 64, 128>}]} {
    %c0 = arith.constant 0 : index
    %c0_0 = arith.constant 0 : index
    %c0_1 = arith.constant 0 : index
    %c0_2 = arith.constant 0 : index
    %0 = vector.load %arg1[%c0, %c0_0, %c0_1, %c0_2] : memref<8x2x8x8xf32, #tpu.memory_space<vmem>>, vector<8x1x8x8xf32>
    %1 = vector.shape_cast %0 : vector<8x1x8x8xf32> to vector<8x8x8xf32>
    %2 = vector.shape_cast %1 : vector<8x8x8xf32> to vector<64x8xf32>
    %c0_3 = arith.constant 0 : index
    %c1 = arith.constant 1 : index
    %c0_4 = arith.constant 0 : index
    %c0_5 = arith.constant 0 : index
    %3 = vector.load %arg1[%c0_3, %c1, %c0_4, %c0_5] : memref<8x2x8x8xf32, #tpu.memory_space<vmem>>, vector<8x1x8x8xf32>
    %4 = vector.shape_cast %3 : vector<8x1x8x8xf32> to vector<8x8x8xf32>
    %5 = vector.shape_cast %4 : vector<8x8x8xf32> to vector<64x8xf32>
    %cst = arith.constant dense<0.000000e+00> : vector<64xf32>
    %6 = vector.multi_reduction <add>, %2, %cst [1] : vector<64x8xf32> to vector<64xf32>
    %7 = vector.shape_cast %6 : vector<64xf32> to vector<64x1xf32>
    %cst_6 = arith.constant dense<0.000000e+00> : vector<64xf32>
    %8 = vector.multi_reduction <add>, %5, %cst_6 [1] : vector<64x8xf32> to vector<64xf32>
    %9 = vector.shape_cast %8 : vector<64xf32> to vector<64x1xf32>
    %10 = arith.addf %7, %9 : vector<64x1xf32>
    %11 = arith.mulf %2, %2 : vector<64x8xf32>
    %cst_7 = arith.constant dense<0.000000e+00> : vector<64xf32>
    %12 = vector.multi_reduction <add>, %11, %cst_7 [1] : vector<64x8xf32> to vector<64xf32>
    %13 = vector.shape_cast %12 : vector<64xf32> to vector<64x1xf32>
    %14 = arith.mulf %5, %5 : vector<64x8xf32>
    %cst_8 = arith.constant dense<0.000000e+00> : vector<64xf32>
    %15 = vector.multi_reduction <add>, %14, %cst_8 [1] : vector<64x8xf32> to vector<64xf32>
    %16 = vector.shape_cast %15 : vector<64xf32> to vector<64x1xf32>
    %17 = arith.addf %13, %16 : vector<64x1xf32>
    %cst_9 = arith.constant 6.250000e-02 : f32
    %18 = vector.broadcast %cst_9 : f32 to vector<64x1xf32>
    %19 = arith.mulf %10, %18 : vector<64x1xf32>
    %cst_10 = arith.constant 6.250000e-02 : f32
    %20 = vector.broadcast %cst_10 : f32 to vector<64x1xf32>
    %21 = arith.mulf %17, %20 : vector<64x1xf32>
    %22 = arith.mulf %19, %19 : vector<64x1xf32>
    %23 = arith.subf %21, %22 : vector<64x1xf32>
    %cst_11 = arith.constant 0.000000e+00 : f32
    %24 = vector.broadcast %cst_11 : f32 to vector<64x1xf32>
    %25 = arith.maximumf %23, %24 : vector<64x1xf32>
    %cst_12 = arith.constant 9.99999974E-6 : f32
    %26 = vector.broadcast %cst_12 : f32 to vector<64x1xf32>
    %27 = arith.addf %25, %26 : vector<64x1xf32>
    %28 = math.rsqrt %27 : vector<64x1xf32>
    %29 = vector.broadcast %19 : vector<64x1xf32> to vector<64x8xf32>
    %30 = arith.subf %2, %29 : vector<64x8xf32>
    %31 = vector.broadcast %28 : vector<64x1xf32> to vector<64x8xf32>
    %32 = arith.mulf %30, %31 : vector<64x8xf32>
    %c0_13 = arith.constant 0 : index
    %c0_14 = arith.constant 0 : index
    %33 = vector.load %arg2[%c0_13, %c0_14] : memref<1x8xf32, #tpu.memory_space<vmem>>, vector<1x8xf32>
    %34 = vector.broadcast %33 : vector<1x8xf32> to vector<64x8xf32>
    %35 = arith.mulf %32, %34 : vector<64x8xf32>
    %c0_15 = arith.constant 0 : index
    %c0_16 = arith.constant 0 : index
    %36 = vector.load %arg3[%c0_15, %c0_16] : memref<1x8xf32, #tpu.memory_space<vmem>>, vector<1x8xf32>
    %37 = vector.broadcast %36 : vector<1x8xf32> to vector<64x8xf32>
    %38 = arith.addf %35, %37 : vector<64x8xf32>
    %39 = vector.broadcast %19 : vector<64x1xf32> to vector<64x8xf32>
    %40 = arith.subf %5, %39 : vector<64x8xf32>
    %41 = vector.broadcast %28 : vector<64x1xf32> to vector<64x8xf32>
    %42 = arith.mulf %40, %41 : vector<64x8xf32>
    %c0_17 = arith.constant 0 : index
    %c0_18 = arith.constant 0 : index
    %43 = vector.load %arg4[%c0_17, %c0_18] : memref<1x8xf32, #tpu.memory_space<vmem>>, vector<1x8xf32>
    %44 = vector.broadcast %43 : vector<1x8xf32> to vector<64x8xf32>
    %45 = arith.mulf %42, %44 : vector<64x8xf32>
    %c0_19 = arith.constant 0 : index
    %c0_20 = arith.constant 0 : index
    %46 = vector.load %arg5[%c0_19, %c0_20] : memref<1x8xf32, #tpu.memory_space<vmem>>, vector<1x8xf32>
    %47 = vector.broadcast %46 : vector<1x8xf32> to vector<64x8xf32>
    %48 = arith.addf %45, %47 : vector<64x8xf32>
    %49 = arith.truncf %38 : vector<64x8xf32> to vector<64x8xbf16>
    %c0_21 = arith.constant 0 : index
    %c0_22 = arith.constant 0 : index
    %50 = vector.load %arg6[%c0_21, %c0_22] : memref<8x128xbf16, #tpu.memory_space<vmem>>, vector<8x128xbf16>
    %cst_23 = arith.constant dense<0.000000e+00> : vector<64x128xf32>
    %51 = tpu.matmul %49, %50, %cst_23 {dimension_numbers = #tpu.dot_dimension_numbers<[1], [0], [0], [1], [0, 0, 1, 1], [], []>} : vector<64x8xbf16>, vector<8x128xbf16>, vector<64x128xf32> -> vector<64x128xf32>
    %52 = arith.truncf %48 : vector<64x8xf32> to vector<64x8xbf16>
    %c0_24 = arith.constant 0 : index
    %c0_25 = arith.constant 0 : index
    %53 = vector.load %arg7[%c0_24, %c0_25] : memref<8x128xbf16, #tpu.memory_space<vmem>>, vector<8x128xbf16>
    %cst_26 = arith.constant dense<0.000000e+00> : vector<64x128xf32>
    %54 = tpu.matmul %52, %53, %cst_26 {dimension_numbers = #tpu.dot_dimension_numbers<[1], [0], [0], [1], [0, 0, 1, 1], [], []>} : vector<64x8xbf16>, vector<8x128xbf16>, vector<64x128xf32> -> vector<64x128xf32>
    %55 = arith.addf %51, %54 : vector<64x128xf32>
    %c0_27 = arith.constant 0 : index
    %c0_28 = arith.constant 0 : index
    %56 = vector.load %arg8[%c0_27, %c0_28] : memref<64x128xf32, #tpu.memory_space<vmem>>, vector<64x128xf32>
    tpu.vector_store %arg8[%c0_27, %c0_28], %55 {strides = array<i32>} : memref<64x128xf32, #tpu.memory_space<vmem>>, vector<64x128xf32>,
    return
  }
  func.func @transform_0(%arg0: i32) -> (i32, i32, i32, i32) {
    %c0_i32 = arith.constant 0 : i32
    %c0_i32_0 = arith.constant 0 : i32
    %c0_i32_1 = arith.constant 0 : i32
    %c0_i32_2 = arith.constant 0 : i32
    return %arg0, %c0_i32, %c0_i32_0, %c0_i32_1 : i32, i32, i32, i32
  }
  func.func @transform_1(%arg0: i32) -> (i32, i32) {
    %c0_i32 = arith.constant 0 : i32
    %c0_i32_0 = arith.constant 0 : i32
    %c0_i32_1 = arith.constant 0 : i32
    return %c0_i32, %c0_i32_0 : i32, i32
  }
  func.func @transform_2(%arg0: i32) -> (i32, i32) {
    %c0_i32 = arith.constant 0 : i32
    %c0_i32_0 = arith.constant 0 : i32
    %c0_i32_1 = arith.constant 0 : i32
    return %c0_i32, %c0_i32_0 : i32, i32
  }
  func.func @transform_3(%arg0: i32) -> (i32, i32) {
    %c0_i32 = arith.constant 0 : i32
    %c0_i32_0 = arith.constant 0 : i32
    %c0_i32_1 = arith.constant 0 : i32
    return %c0_i32, %c0_i32_0 : i32, i32
  }
  func.func @transform_4(%arg0: i32) -> (i32, i32) {
    %c0_i32 = arith.constant 0 : i32
    %c0_i32_0 = arith.constant 0 : i32
    %c0_i32_1 = arith.constant 0 : i32
    return %c0_i32, %c0_i32_0 : i32, i32
  }
  func.func @transform_5(%arg0: i32) -> (i32, i32) {
    %c0_i32 = arith.constant 0 : i32
    %c0_i32_0 = arith.constant 0 : i32
    %c0_i32_1 = arith.constant 0 : i32
    return %c0_i32, %c0_i32_0 : i32, i32
  }
  func.func @transform_6(%arg0: i32) -> (i32, i32) {
    %c0_i32 = arith.constant 0 : i32
    %c0_i32_0 = arith.constant 0 : i32
    %c0_i32_1 = arith.constant 0 : i32
    return %c0_i32, %c0_i32_0 : i32, i32
  }
  func.func @transform_7(%arg0: i32) -> (i32, i32) {
    %c0_i32 = arith.constant 0 : i32
    %c0_i32_0 = arith.constant 0 : i32
    return %arg0, %c0_i32 : i32, i32
  }
}

module attributes {stable_mosaic.version = 11 : i64} {
  func.func @_patch_merging_kernel(%arg0: i32, %arg1: memref<8x2x8x8xf32, #tpu.memory_space<vmem>>, %arg2: memref<1x8xf32, #tpu.memory_space<vmem>>, %arg3: memref<1x8xf32, #tpu.memory_space<vmem>>, %arg4: memref<1x8xf32, #tpu.memory_space<vmem>>, %arg5: memref<1x8xf32, #tpu.memory_space<vmem>>, %arg6: memref<8x128xbf16, #tpu.memory_space<vmem>>, %arg7: memref<8x128xbf16, #tpu.memory_space<vmem>>, %arg8: memref<64x128xf32, #tpu.memory_space<vmem>>) attributes {dimension_semantics = [#tpu.dimension_semantics<parallel>], iteration_bounds = array<i64: 2>, scalar_prefetch = 0 : i64, scratch_operands = 0 : i64, tpu.core_type = #tpu.core_type<tc>, window_params = [{transform_indices = @transform_0, window_bounds = array<i64: 8, 2, 8, 8>}, {pipeline_mode = #tpu.pipeline_mode<synchronous>, transform_indices = @transform_1, window_bounds = array<i64: 1, 8>}, {pipeline_mode = #tpu.pipeline_mode<synchronous>, transform_indices = @transform_2, window_bounds = array<i64: 1, 8>}, {pipeline_mode = #tpu.pipeline_mode<synchronous>, transform_indices = @transform_3, window_bounds = array<i64: 1, 8>}, {pipeline_mode = #tpu.pipeline_mode<synchronous>, transform_indices = @transform_4, window_bounds = array<i64: 1, 8>}, {pipeline_mode = #tpu.pipeline_mode<synchronous>, transform_indices = @transform_5, window_bounds = array<i64: 8, 128>}, {pipeline_mode = #tpu.pipeline_mode<synchronous>, transform_indices = @transform_6, window_bounds = array<i64: 8, 128>}, {transform_indices = @transform_7, window_bounds = array<i64: 64, 128>}]} {
    %c0 = arith.constant 0 : index
    %c0_0 = arith.constant 0 : index
    %c0_1 = arith.constant 0 : index
    %c0_2 = arith.constant 0 : index
    %0 = vector.load %arg1[%c0, %c0_0, %c0_1, %c0_2] : memref<8x2x8x8xf32, #tpu.memory_space<vmem>>, vector<8x1x8x8xf32>
    %1 = vector.shape_cast %0 : vector<8x1x8x8xf32> to vector<8x8x8xf32>
    %2 = vector.shape_cast %1 : vector<8x8x8xf32> to vector<64x8xf32>
    %c0_3 = arith.constant 0 : index
    %c1 = arith.constant 1 : index
    %c0_4 = arith.constant 0 : index
    %c0_5 = arith.constant 0 : index
    %3 = vector.load %arg1[%c0_3, %c1, %c0_4, %c0_5] : memref<8x2x8x8xf32, #tpu.memory_space<vmem>>, vector<8x1x8x8xf32>
    %4 = vector.shape_cast %3 : vector<8x1x8x8xf32> to vector<8x8x8xf32>
    %5 = vector.shape_cast %4 : vector<8x8x8xf32> to vector<64x8xf32>
    %cst = arith.constant dense<0.000000e+00> : vector<64xf32>
    %6 = vector.multi_reduction <add>, %2, %cst [1] : vector<64x8xf32> to vector<64xf32>
    %7 = vector.shape_cast %6 : vector<64xf32> to vector<64x1xf32>
    %cst_6 = arith.constant dense<0.000000e+00> : vector<64xf32>
    %8 = vector.multi_reduction <add>, %5, %cst_6 [1] : vector<64x8xf32> to vector<64xf32>
    %9 = vector.shape_cast %8 : vector<64xf32> to vector<64x1xf32>
    %10 = arith.addf %7, %9 : vector<64x1xf32>
    %11 = arith.mulf %2, %2 : vector<64x8xf32>
    %cst_7 = arith.constant dense<0.000000e+00> : vector<64xf32>
    %12 = vector.multi_reduction <add>, %11, %cst_7 [1] : vector<64x8xf32> to vector<64xf32>
    %13 = vector.shape_cast %12 : vector<64xf32> to vector<64x1xf32>
    %14 = arith.mulf %5, %5 : vector<64x8xf32>
    %cst_8 = arith.constant dense<0.000000e+00> : vector<64xf32>
    %15 = vector.multi_reduction <add>, %14, %cst_8 [1] : vector<64x8xf32> to vector<64xf32>
    %16 = vector.shape_cast %15 : vector<64xf32> to vector<64x1xf32>
    %17 = arith.addf %13, %16 : vector<64x1xf32>
    %cst_9 = arith.constant 6.250000e-02 : f32
    %18 = vector.broadcast %cst_9 : f32 to vector<64x1xf32>
    %19 = arith.mulf %10, %18 : vector<64x1xf32>
    %cst_10 = arith.constant 6.250000e-02 : f32
    %20 = vector.broadcast %cst_10 : f32 to vector<64x1xf32>
    %21 = arith.mulf %17, %20 : vector<64x1xf32>
    %22 = arith.mulf %19, %19 : vector<64x1xf32>
    %23 = arith.subf %21, %22 : vector<64x1xf32>
    %cst_11 = arith.constant 0.000000e+00 : f32
    %24 = vector.broadcast %cst_11 : f32 to vector<64x1xf32>
    %25 = arith.maximumf %23, %24 : vector<64x1xf32>
    %cst_12 = arith.constant 9.99999974E-6 : f32
    %26 = vector.broadcast %cst_12 : f32 to vector<64x1xf32>
    %27 = arith.addf %25, %26 : vector<64x1xf32>
    %28 = math.rsqrt %27 : vector<64x1xf32>
    %29 = vector.broadcast %19 : vector<64x1xf32> to vector<64x8xf32>
    %30 = arith.subf %2, %29 : vector<64x8xf32>
    %31 = vector.broadcast %28 : vector<64x1xf32> to vector<64x8xf32>
    %32 = arith.mulf %30, %31 : vector<64x8xf32>
    %c0_13 = arith.constant 0 : index
    %c0_14 = arith.constant 0 : index
    %33 = vector.load %arg2[%c0_13, %c0_14] : memref<1x8xf32, #tpu.memory_space<vmem>>, vector<1x8xf32>
    %34 = vector.broadcast %33 : vector<1x8xf32> to vector<64x8xf32>
    %35 = arith.mulf %32, %34 : vector<64x8xf32>
    %c0_15 = arith.constant 0 : index
    %c0_16 = arith.constant 0 : index
    %36 = vector.load %arg3[%c0_15, %c0_16] : memref<1x8xf32, #tpu.memory_space<vmem>>, vector<1x8xf32>
    %37 = vector.broadcast %36 : vector<1x8xf32> to vector<64x8xf32>
    %38 = arith.addf %35, %37 : vector<64x8xf32>
    %39 = vector.broadcast %19 : vector<64x1xf32> to vector<64x8xf32>
    %40 = arith.subf %5, %39 : vector<64x8xf32>
    %41 = vector.broadcast %28 : vector<64x1xf32> to vector<64x8xf32>
    %42 = arith.mulf %40, %41 : vector<64x8xf32>
    %c0_17 = arith.constant 0 : index
    %c0_18 = arith.constant 0 : index
    %43 = vector.load %arg4[%c0_17, %c0_18] : memref<1x8xf32, #tpu.memory_space<vmem>>, vector<1x8xf32>
    %44 = vector.broadcast %43 : vector<1x8xf32> to vector<64x8xf32>
    %45 = arith.mulf %42, %44 : vector<64x8xf32>
    %c0_19 = arith.constant 0 : index
    %c0_20 = arith.constant 0 : index
    %46 = vector.load %arg5[%c0_19, %c0_20] : memref<1x8xf32, #tpu.memory_space<vmem>>, vector<1x8xf32>
    %47 = vector.broadcast %46 : vector<1x8xf32> to vector<64x8xf32>
    %48 = arith.addf %45, %47 : vector<64x8xf32>
    %49 = arith.truncf %38 : vector<64x8xf32> to vector<64x8xbf16>
    %c0_21 = arith.constant 0 : index
    %c0_22 = arith.constant 0 : index
    %50 = vector.load %arg6[%c0_21, %c0_22] : memref<8x128xbf16, #tpu.memory_space<vmem>>, vector<8x128xbf16>
    %cst_23 = arith.constant dense<0.000000e+00> : vector<64x128xf32>
    %51 = tpu.matmul %49, %50, %cst_23 {dimension_numbers = #tpu.dot_dimension_numbers<[1], [0], [0], [1], [0, 0, 1, 1], [], []>} : vector<64x8xbf16>, vector<8x128xbf16>, vector<64x128xf32> -> vector<64x128xf32>
    %52 = arith.truncf %48 : vector<64x8xf32> to vector<64x8xbf16>
    %c0_24 = arith.constant 0 : index
    %c0_25 = arith.constant 0 : index
    %53 = vector.load %arg7[%c0_24, %c0_25] : memref<8x128xbf16, #tpu.memory_space<vmem>>, vector<8x128xbf16>
    %cst_26 = arith.constant dense<0.000000e+00> : vector<64x128xf32>
    %54 = tpu.matmul %52, %53, %cst_26 {dimension_numbers = #tpu.dot_dimension_numbers<[1], [0], [0], [1], [0, 0, 1, 1], [], []>} : vector<64x8xbf16>, vector<8x128xbf16>, vector<64x128xf32> -> vector<64x128xf32>
    %55 = arith.addf %51, %54 : vector<64x128xf32>
    %c0_27 = arith.constant 0 : index
    %c0_28 = arith.constant 0 : index
    %56 = vector.load %arg8[%c0_27, %c0_28] : memref<64x128xf32, #tpu.memory_space<vmem>>, vector<64x128xf32>
    tpu.vector_store %arg8[%c0_27, %c0_28], %55 {strides = array<i32>} : memref<64x128xf32, #tpu.memory_space<vmem>>, vector<64x128xf32>,
    return
  }
  func.func @transform_0(%arg0: i32) -> (i32, i32, i32, i32) {
    %c0_i32 = arith.constant 0 : i32
    %c0_i32_0 = arith.constant 0 : i32
    %c0_i32_1 = arith.constant 0 : i32
    %c0_i32_2 = arith.constant 0 : i32
    return %arg0, %c0_i32, %c0_i32_0, %c0_i32_1 : i32, i32, i32, i32
  }
  func.func @transform_1(%arg0: i32) -> (i32, i32) {
    %c0_i32 = arith.constant 0 : i32
    %c0_i32_0 = arith.constant 0 : i32
    %c0_i32_1 = arith.constant 0 : i32
    return %c0_i32, %c0_i32_0 : i32, i32
  }
  func.func @transform_2(%arg0: i32) -> (i32, i32) {
    %c0_i32 = arith.constant 0 : i32
    %c0_i32_0 = arith.constant 0 : i32
    %c0_i32_1 = arith.constant 0 : i32
    return %c0_i32, %c0_i32_0 : i32, i32
  }
  func.func @transform_3(%arg0: i32) -> (i32, i32) {
    %c0_i32 = arith.constant 0 : i32
    %c0_i32_0 = arith.constant 0 : i32
    %c0_i32_1 = arith.constant 0 : i32
    return %c0_i32, %c0_i32_0 : i32, i32
  }
  func.func @transform_4(%arg0: i32) -> (i32, i32) {
    %c0_i32 = arith.constant 0 : i32
    %c0_i32_0 = arith.constant 0 : i32
    %c0_i32_1 = arith.constant 0 : i32
    return %c0_i32, %c0_i32_0 : i32, i32
  }
  func.func @transform_5(%arg0: i32) -> (i32, i32) {
    %c0_i32 = arith.constant 0 : i32
    %c0_i32_0 = arith.constant 0 : i32
    %c0_i32_1 = arith.constant 0 : i32
    return %c0_i32, %c0_i32_0 : i32, i32
  }
  func.func @transform_6(%arg0: i32) -> (i32, i32) {
    %c0_i32 = arith.constant 0 : i32
    %c0_i32_0 = arith.constant 0 : i32
    %c0_i32_1 = arith.constant 0 : i32
    return %c0_i32, %c0_i32_0 : i32, i32
  }
  func.func @transform_7(%arg0: i32) -> (i32, i32) {
    %c0_i32 = arith.constant 0 : i32
    %c0_i32_0 = arith.constant 0 : i32
    return %arg0, %c0_i32 : i32, i32
  }
}

</mosaic_0001>

<bundles_post_ra>
// kernel: tpu_custom_call.1
= control target key start
LH: loop header
LB: loop body
LE: loop exit
PB: predicated region body
PF: predicated region fallthrough
CT: control target
= control target key end

     0   :  { %12 = vsyncpa [#allocation3], 0  ;;  %s1383_s0 = inlined_call_operand.vmem [shape: f32[16,2,8,8], index: 0, kind: input, shape index: {}]   ;;  %s1384_s1 = inlined_call_operand.vmem [shape: f32[1,8], index: 1, kind: input, shape index: {}]   ;;  %s1385_s2 = inlined_call_operand.vmem [shape: f32[1,8], index: 2, kind: input, shape index: {}]   ;;  %s1386_s3 = inlined_call_operand.vmem [shape: f32[1,8], index: 3, kind: input, shape index: {}]   ;;  %s1387_s4 = inlined_call_operand.vmem [shape: f32[1,8], index: 4, kind: input, shape index: {}]   ;;  %s1388_s5 = inlined_call_operand.vmem [shape: bf16[8,128], index: 5, kind: input, shape index: {}]   ;;  %s1389_s6 = inlined_call_operand.vmem [shape: bf16[8,128], index: 6, kind: input, shape index: {}]   ;;  %s1390_s7 = inlined_call_operand.hbm [shape: f32[128,128], index: 7, kind: output, shape index: {}]  }
   0x1   :  { %14 = vsyncpa [#allocation3 + $0x1], 0  ;;  %s1023_s24 = smov 0   ;;  %s1025_s25 = smov 0  }
   0x2   :  { %s1027_s26 = smov 0   ;;  %s1029_s27 = smov 0  }
   0x3 LB: > { %s1044_s28 = sadd.s32 4294967295, %s979_s27   ;;  %s823_s29 = sadd.s32 4294967294, %s979_s27   ;;  %s979_s27 = sphi %s1029_s27, %s1396_s27   ;;  %s975_s26 = sphi %s1027_s26, %s1395_s26   ;;  %s971_s25 = sphi %s1025_s25, %s1394_s25   ;;  %s967_s24 = sphi %s1023_s24, %s1393_s24  }
   0x4   : > { %s1048_s30 = sadd.s32 1, %s979_s27   ;;  %s179_s8 = sadd.s32 1, %s975_s26 }
   0x5   : > { %s176_s9 = ssub.s32 %s979_s27, %s1048_s30  ;;  %p189_p0 = scmp.ne.s32.totalorder %s975_s26, %s971_s25 }
   0x6   : > { %p177_p1 = scmp.eq.s32.totalorder %s176_s9, 0  ;;  %p190_p2 = scmp.eq.s32.totalorder %s1044_s28, 1 }
   0x7   : > { %p195_p3 = scmp.ne.s32.totalorder %s971_s25, %s967_s24  ;;  %p196_p4 = scmp.eq.s32.totalorder %s823_s29, 1 }
   0x8   : > { %s1059_s10 = scalar_select %p177_p1, %s975_s26, %s179_s8  }
   0x9   : > { %p1061_p5 = por %p190_p2, %p189_p0  ;;  %p1065_p6 = por %p196_p4, %p195_p3 }
   0xa   : > { %p826_p7 = scmp.ge.s32.totalorder %s979_s27, 1  ;;  %p242_p8 = scmp.lt.s32.totalorder %s979_s27, 3 }
   0xc   : > { %p243_p9 = pnand %p826_p7, %p242_p8 }
   0xd   : > { %s828_s13 = sshll.u32 (!%p243_p9), %s1044_s28, 3  ;;  %s272_s16 = sand.u32 (!%p243_p9), 1, %s971_s25  }
   0xe   : > { %246 = sbr.rel (%p243_p9) target bundleno = 397 (0x18d), region = 48  ;;  %p276_p10 = scmp.lt.s32.totalorder (!%p243_p9), %s828_s13, 15 }
   0xf   : > { %s853_s19 = sshll.u32 (!%p243_p9), %s1044_s28, 6  ;;  %s746_s8 = scalar_lea.sflag (!%p243_p9), [#allocation3], %s272_s16 }
  0x10   : > { %s757_s22 = scalar_lea.hbm (!%p243_p9), %s1390_s7, %s853_s19  ;;  %s937_s15 = scalar_lea.hbm (!%p243_p9), %s1390_s7, 128 }
  0x11   : > { %s760_s29 = sshll.u32 (!%p243_p9), %s757_s22, 4  ;;  %s761_s29 = int_to_ptr.hbm [resolvable:$true] %s760_s29 }
  0x12   : > { %s931_s28 = sshra.s32 (!%p243_p9), %s761_s29, 4  ;;  %s932_s28 = int_to_ptr.hbm [resolvable:$true] %s931_s28 }
  0x13   : > { %s1398_s13 = smov (!%p276_p10, %s828_s13), 15  ;;  %vm301_vm0 = vcmask 64512   ;;  %vm660_vm1 = vcmask 1043456   ;;  %s933_s9 = scalar_lea.hbm %s932_s28, 64 }
  0x14   : > { %s852_s14 = sshll.u32 %s1398_s13, 4  ;;  %p934_p11 = scmp.ne.s32.totalorder %s932_s28, %s933_s9 }
  0x15   : > { %s1075_s17 = scalar_lea.vmem %s1383_s0, %s852_s14  ;;  %p938_p0 = scmp.lt.s32.totalorder %s932_s28, %s1390_s7 }
  0x16   : > { %v1078_v0 = vld [vmem:[%s1075_s17 + $0x48] sm:$0xff]  ;;  %v1081_v1 = vld [vmem:[%s1075_s17 + $0x40] sm:$0xff]  ;;  %v1090_v5 = vld [vmem:[%s1075_s17 + $0x50] sm:$0xff]  ;;  %p935_p12 = pnand %p934_p11, %p1061_p5  ;;  %p939_p1 = scmp.lt.s32.totalorder %s937_s15, %s933_s9 }
  0x17   : > { %v338_v2 = vsel %vm301_vm0, %v1078_v0, 0.0  ;;  %v314_v3 = vsel %vm301_vm0, %v1081_v1, 0.0  ;;  %v362_v4 = vmul.f32 %v1081_v1, %v1081_v1  ;;  %v1094_v7 = vld [vmem:[%s1075_s17 + $0x58] sm:$0xff]  ;;  %v363_v8 = vmul.f32 %v1090_v5, %v1090_v5  ;;  %v1108_v14 = vld [vmem:[%s1075_s17] sm:$0xff]  ;;  %v1115_v18 = vld [vmem:[%s1075_s17 + $0x8] sm:$0xff] }
  0x18   : > { %339 = vadd.xlane.f32.xlu1 %v338_v2  ;;  %315 = vadd.xlane.f32.xlu0 %v314_v3  ;;  %v341_v9 = vsel %vm301_vm0, %v1094_v7, 0.0  ;;  %v317_v10 = vsel %vm301_vm0, %v1090_v5, 0.0  ;;  %v395_v12 = vmul.f32 %v1094_v7, %v1094_v7  ;;  %v394_v13 = vmul.f32 %v1078_v0, %v1078_v0  ;;  %v1118_v19 = vld [vmem:[%s1075_s17 + $0x10] sm:$0xff]  ;;  %v1121_v20 = vld [vmem:[%s1075_s17 + $0x18] sm:$0xff]  ;;  %v1141_v31 = vld [vmem:[%s1075_s17 + $0x60] sm:$0xff]  ;;  %p936_p13 = pneg %p935_p12  ;;  %p940_p2 = por %p939_p1, %p938_p0 }
  0x19   : > { %v378_v6 = vsel %vm301_vm0, %v362_v4, 0.0  ;;  %v381_v11 = vsel %vm301_vm0, %v363_v8, 0.0  ;;  %v302_v17 = vsel %vm301_vm0, %v1108_v14, 0.0  ;;  %v326_v21 = vsel %vm301_vm0, %v1115_v18, 0.0  ;;  %v1144_v32 = vld [vmem:[%s1075_s17 + $0x70] sm:$0xff]  ;;  %v1152_v36 = vld [vmem:[%s1075_s17 + $0x78] sm:$0xff] }
  0x1a   : > { %379 = vadd.xlane.f32.xlu2 %v378_v6  ;;  %v413_v15 = vsel %vm301_vm0, %v395_v12, 0.0  ;;  %v410_v16 = vsel %vm301_vm0, %v394_v13, 0.0  ;;  %v305_v22 = vsel %vm301_vm0, %v1118_v19, 0.0  ;;  %v329_v23 = vsel %vm301_vm0, %v1121_v20, 0.0  ;;  %v1155_v37 = vld [vmem:[%s1075_s17 + $0x68] sm:$0xff]  ;;  %v1174_v48 = vld [vmem:[%s1075_s17 + $0x30] sm:$0xff]  ;;  %p941_p3 = pnand %p940_p2, %p936_p13 }
  0x1b   : > { %v359_v24 = vmul.f32 %v1118_v19, %v1118_v19  ;;  %v358_v25 = vmul.f32 %v1108_v14, %v1108_v14  ;;  %v390_v26 = vmul.f32 %v1115_v18, %v1115_v18  ;;  %v391_v30 = vmul.f32 %v1121_v20, %v1121_v20  ;;  %v1177_v49 = vld [vmem:[%s1075_s17 + $0x20] sm:$0xff]  ;;  %v1180_v50 = vld [vmem:[%s1075_s17 + $0x28] sm:$0xff]  ;;  %v1191_v55 = vld [vmem:[%s1075_s17 + $0x38] sm:$0xff]  ;;  %s827_s17 = sshll.u32 %s272_s16, 6 }
  0x1c   : > { %v320_v33 = vsel %vm301_vm0, %v1141_v31, 0.0  ;;  %v323_v35 = vsel %vm301_vm0, %v1144_v32, 0.0  ;;  %v364_v38 = vmul.f32 %v1141_v31, %v1141_v31  ;;  %v347_v39 = vsel %vm301_vm0, %v1152_v36, 0.0  ;;  %s1339_s18 = scalar_lea.vmem [#allocation2], %s827_s17 }
  0x1d   : > { %v369_v27 = vsel %vm301_vm0, %v359_v24, 0.0  ;;  %v366_v28 = vsel %vm301_vm0, %v358_v25, 0.0  ;;  %v398_v29 = vsel %vm301_vm0, %v390_v26, 0.0  ;;  %v401_v34 = vsel %vm301_vm0, %v391_v30, 0.0  ;;  %s758_s23 = sshll.u32 %s1339_s18, 4  ;;  %s759_s23 = int_to_ptr.vmem [resolvable:$true] %s758_s23 }
  0x1e   : > { %v344_v40 = vsel %vm301_vm0, %v1155_v37, 0.0  ;;  %v384_v41 = vsel %vm301_vm0, %v364_v38, 0.0  ;;  %v396_v42 = vmul.f32 %v1155_v37, %v1155_v37  ;;  %v365_v43 = vmul.f32 %v1144_v32, %v1144_v32 }
  0x1f   : > { %v397_v44 = vmul.f32 %v1152_v36, %v1152_v36  ;;  %v311_v51 = vsel %vm301_vm0, %v1174_v48, 0.0  ;;  %v308_v52 = vsel %vm301_vm0, %v1177_v49, 0.0  ;;  %v332_v53 = vsel %vm301_vm0, %v1180_v50, 0.0 }
  0x20   : > { %342 = vadd.xlane.f32.xlu1 %v341_v9  ;;  %318 = vadd.xlane.f32.xlu0 %v317_v10  ;;  %v416_v45 = vsel %vm301_vm0, %v396_v42, 0.0  ;;  %v387_v46 = vsel %vm301_vm0, %v365_v43, 0.0  ;;  %v360_v54 = vmul.f32 %v1177_v49, %v1177_v49  ;;  %v361_v56 = vmul.f32 %v1174_v48, %v1174_v48 }
  0x21   : > { %v419_v47 = vsel %vm301_vm0, %v397_v44, 0.0  ;;  %v335_v58 = vsel %vm301_vm0, %v1191_v55, 0.0  ;;  %v393_v60 = vmul.f32 %v1191_v55, %v1191_v55  ;;  %v392_v61 = vmul.f32 %v1180_v50, %v1180_v50 }
  0x22   : > { %382 = vadd.xlane.f32.xlu2 %v381_v11  ;;  %v372_v57 = vsel %vm301_vm0, %v360_v54, 0.0  ;;  %v375_v59 = vsel %vm301_vm0, %v361_v56, 0.0 }
  0x23   : > { %v407_v62 = vsel %vm301_vm0, %v393_v60, 0.0  ;;  %v404_v63 = vsel %vm301_vm0, %v392_v61, 0.0 }
  0x28   : > { %414 = vadd.xlane.f32.xlu1 %v413_v15  ;;  %411 = vadd.xlane.f32.xlu0 %v410_v16 }
  0x2a   : > { %303 = vadd.xlane.f32.xlu2 %v302_v17 }
  0x30   : > { %327 = vadd.xlane.f32.xlu1 %v326_v21  ;;  %306 = vadd.xlane.f32.xlu0 %v305_v22  ;;  %v647_v22 = vld [vmem:[%s1389_s6] sm:$0xf] }
  0x31   : > { %v662_v25 = vsel %vm660_vm1, %v647_v22, 0 }
  0x32   : > { %330 = vadd.xlane.f32.xlu2 %v329_v23  ;;  %v642_v23 = vld [vmem:[%s1388_s5] sm:$0xf]  ;;  %854 = vmatpush.bf16.msra.mxu2 %v662_v25 }
  0x33   : > { %v706_v26 = vsel %vm660_vm1, %v642_v23, 0  ;;  %671 = vmatpush.bf16.msra.mxu0 %v662_v25 }
  0x34   : > { %855 = vmatpush.bf16.msra.mxu3 %v706_v26  ;;  %715 = vmatpush.bf16.msra.mxu1 %v706_v26 }
  0x38   : > { %370 = vadd.xlane.f32.xlu1 %v369_v27  ;;  %367 = vadd.xlane.f32.xlu0 %v366_v28 }
  0x3a   : > { %399 = vadd.xlane.f32.xlu2 %v398_v29 }
  0x40   : > { %321 = vadd.xlane.f32.xlu1 %v320_v33  ;;  %402 = vadd.xlane.f32.xlu0 %v401_v34 }
  0x42   : > { %324 = vadd.xlane.f32.xlu2 %v323_v35 }
  0x48   : > { %348 = vadd.xlane.f32.xlu1 %v347_v39  ;;  %345 = vadd.xlane.f32.xlu0 %v344_v40 }
  0x4a   : > { %385 = vadd.xlane.f32.xlu2 %v384_v41 }
  0x50   : > { %417 = vadd.xlane.f32.xlu1 %v416_v45  ;;  %388 = vadd.xlane.f32.xlu0 %v387_v46 }
  0x52   : > { %420 = vadd.xlane.f32.xlu2 %v419_v47 }
  0x58   : > { %312 = vadd.xlane.f32.xlu1 %v311_v51  ;;  %309 = vadd.xlane.f32.xlu0 %v308_v52 }
  0x5a   : > { %333 = vadd.xlane.f32.xlu2 %v332_v53 }
  0x60   : > { %373 = vadd.xlane.f32.xlu1 %v372_v57  ;;  %336 = vadd.xlane.f32.xlu0 %v335_v58 }
  0x62   : > { %376 = vadd.xlane.f32.xlu2 %v375_v59 }
  0x68   : > { %408 = vadd.xlane.f32.xlu1 %v407_v62  ;;  %405 = vadd.xlane.f32.xlu0 %v404_v63 }
  0x8b   : > { %v340_v2 = vpop.xlane.xlu1 %339  ;;  %v316_v3 = vpop.xlane.xlu0 %315 }
  0x8c   : > { %v354_v10 = vadd.f32 %v340_v2, %v316_v3 }
  0x8d   : > { %v380_v4 = vpop.xlane.xlu2 %379 }
  0x8e   : > { %v1205_v12 = vmul.f32 0.0625, %v354_v10 }
  0x90   : > { %v450_v29 = vmul.f32 %v1205_v12, %v1205_v12  ;;  %v602_v26 = vsub.f32 %v1078_v0, %v1205_v12 }
  0x93   : > { %v343_v6 = vpop.xlane.xlu1 %342  ;;  %v319_v8 = vpop.xlane.xlu0 %318 }
  0x94   : > { %v355_v11 = vadd.f32 %v343_v6, %v319_v8 }
  0x95   : > { %v383_v9 = vpop.xlane.xlu2 %382 }
  0x96   : > { %v1207_v13 = vmul.f32 0.0625, %v355_v11 }
  0x98   : > { %v451_v28 = vmul.f32 %v1207_v13, %v1207_v13 }
  0x9b   : > { %v415_v15 = vpop.xlane.xlu1 %414  ;;  %v412_v16 = vpop.xlane.xlu0 %411 }
  0x9c   : > { %v427_v17 = vadd.f32 %v415_v15, %v383_v9  ;;  %v426_v21 = vadd.f32 %v412_v16, %v380_v4  ;;  %v562_v16 = vsub.f32 %v1081_v1, %v1205_v12  ;;  %v603_v1 = vsub.f32 %v1094_v7, %v1207_v13  ;;  %v1249_v7 = vld [vmem:[%s1387_s4] ss:$0 sm:$0xff] }
  0x9d   : > { %v304_v24 = vpop.xlane.xlu2 %303 }
  0x9e   : > { %v443_v27 = vmul.f32 0.0625, %v427_v17  ;;  %v442_v30 = vmul.f32 0.0625, %v426_v21 }
  0xa0   : > { %v459_v33 = vsub.f32 %v443_v27, %v451_v28  ;;  %v458_v34 = vsub.f32 %v442_v30, %v450_v29  ;;  %v563_v27 = vsub.f32 %v1090_v5, %v1207_v13  ;;  %v1239_v29 = vld [vmem:[%s1386_s3] ss:$0 sm:$0xff] }
  0xa1   : > { %v1244_v30 = vld [vmem:[%s1384_s1] ss:$0 sm:$0xff] }
  0xa2   : > { %v467_v35 = vmax.f32 %v459_v33, 0.0  ;;  %v466_v38 = vmax.f32 %v458_v34, 0.0 }
  0xa3   : > { %v328_v39 = vpop.xlane.xlu1 %327  ;;  %v307_v40 = vpop.xlane.xlu0 %306 }
  0xa4   : > { %v475_v41 = vadd.f32 1e-05, %v467_v35  ;;  %v474_v42 = vadd.f32 1e-05, %v466_v38  ;;  %v350_v44 = vadd.f32 %v328_v39, %v304_v24  ;;  %v1254_v35 = vld [vmem:[%s1385_s2] ss:$0 sm:$0xff] }
  0xa5   : > { %v331_v43 = vpop.xlane.xlu2 %330 }
  0xa6   : > { %901 = vrsqrt.f32 %v475_v41  ;;  %v1219_v51 = vmul.f32 0.0625, %v350_v44  ;;  %v351_v57 = vadd.f32 %v331_v43, %v307_v40  ;;  %vm534_vm4 = vweird.f32 %v475_v41 }
  0xa7   : > { %903 = vrsqrt.f32 %v474_v42  ;;  %vm524_vm5 = vweird.f32 %v474_v42 }
  0xa8   : > { %v446_v61 = vmul.f32 %v1219_v51, %v1219_v51  ;;  %v1223_v3 = vmul.f32 0.0625, %v351_v57 }
  0xaa   : > { %v447_v25 = vmul.f32 %v1223_v3, %v1223_v3 }
  0xab   : > { %v371_v45 = vpop.xlane.xlu1 %370  ;;  %v368_v46 = vpop.xlane.xlu0 %367 }
  0xac   : > { %v902_v47 = vpop.eup %901 }
  0xad   : > { %v904_v52 = vpop.eup %903  ;;  %v529_v53 = vmul.f32 %v902_v47, %v475_v41  ;;  %v400_v54 = vpop.xlane.xlu2 %399  ;;  %vm535_vm2 = vweird.f32 %v902_v47 }
  0xae   : > { %v519_v56 = vmul.f32 %v904_v52, %v474_v42  ;;  %v422_v58 = vadd.f32 %v400_v54, %v368_v46  ;;  %vm525_vm3 = vweird.f32 %v904_v52  ;;  %vm536_vm6 = vmor %vm534_vm4, %vm535_vm2 }
  0xaf   : > { %v530_v59 = vmul.f32 %v902_v47, %v529_v53  ;;  %vm526_vm7 = vmor %vm524_vm5, %vm525_vm3 }
  0xb0   : > { %v520_v60 = vmul.f32 %v904_v52, %v519_v56  ;;  %v438_v62 = vmul.f32 0.0625, %v422_v58 }
  0xb1   : > { %v531_v63 = vmul.f32 0.5, %v530_v59 }
  0xb2   : > { %v521_v2 = vmul.f32 0.5, %v520_v60  ;;  %v454_v4 = vsub.f32 %v438_v62, %v446_v61 }
  0xb3   : > { %v532_v6 = vsub.f32 1.5, %v531_v63  ;;  %v322_v8 = vpop.xlane.xlu1 %321  ;;  %v403_v9 = vpop.xlane.xlu0 %402 }
  0xb4   : > { %v522_v10 = vsub.f32 1.5, %v521_v2  ;;  %v462_v11 = vmax.f32 %v454_v4, 0.0  ;;  %v423_v15 = vadd.f32 %v403_v9, %v371_v45 }
  0xb5   : > { %v533_v17 = vmul.f32 %v902_v47, %v532_v6  ;;  %v325_v21 = vpop.xlane.xlu2 %324 }
  0xb6   : > { %v523_v22 = vmul.f32 %v904_v52, %v522_v10  ;;  %v470_v23 = vadd.f32 1e-05, %v462_v11  ;;  %v439_v24 = vmul.f32 0.0625, %v423_v15 }
  0xb7   : > { %v537_v28 = vsel %vm536_vm6, %v902_v47, %v533_v17 }
  0xb8   : > { %905 = vrsqrt.f32 %v470_v23  ;;  %v455_v0 = vsub.f32 %v439_v24, %v447_v25  ;;  %v527_v12 = vsel %vm526_vm7, %v904_v52, %v523_v22  ;;  %v611_v33 = vmul.f32 %v603_v1, %v537_v28 }
  0xb9   : > { %v610_v5 = vmul.f32 %v602_v26, %v527_v12  ;;  %v570_v13 = vmul.f32 %v562_v16, %v527_v12  ;;  %v571_v34 = vmul.f32 %v563_v27, %v537_v28  ;;  %vm484_vm9 = vweird.f32 %v470_v23 }
  0xba   : > { %v463_v38 = vmax.f32 %v455_v0, 0.0  ;;  %v623_v42 = vmul.f32 %v1239_v29, %v611_v33  ;;  %v598_v12 = vsub.f32 %v1115_v18, %v1219_v51 }
  0xbb   : > { %v349_v39 = vpop.xlane.xlu1 %348  ;;  %v346_v40 = vpop.xlane.xlu0 %345  ;;  %v622_v41 = vmul.f32 %v1239_v29, %v610_v5  ;;  %v582_v43 = vmul.f32 %v1244_v30, %v570_v13  ;;  %v583_v44 = vmul.f32 %v1244_v30, %v571_v34  ;;  %v558_v13 = vsub.f32 %v1108_v14, %v1219_v51 }
  0xbc   : > { %v471_v45 = vadd.f32 1e-05, %v463_v38  ;;  %v635_v52 = vadd.f32 %v1249_v7, %v623_v42  ;;  %v356_v57 = vadd.f32 %v346_v40, %v322_v8  ;;  %v357_v61 = vadd.f32 %v349_v39, %v325_v21 }
  0xbd   : > { %v386_v46 = vpop.xlane.xlu2 %385  ;;  %v634_v47 = vadd.f32 %v1249_v7, %v622_v41  ;;  %v594_v53 = vadd.f32 %v1254_v35, %v582_v43  ;;  %v595_v54 = vadd.f32 %v1254_v35, %v583_v44  ;;  %v599_v44 = vsub.f32 %v1121_v20, %v1223_v3 }
  0xbe   : > { %v906_v56 = vpop.eup %905  ;;  %907 = vrsqrt.f32 %v471_v45  ;;  %v1266_v63 = vmul.f32 0.0625, %v356_v57  ;;  %v1268_v10 = vmul.f32 0.0625, %v357_v61  ;;  %vm494_vm12 = vweird.f32 %v471_v45 }
  0xbf   : > { %v479_v58 = vmul.f32 %v906_v56, %v470_v23  ;;  %v645_v59 = vpack.c.bf16 %v635_v52, %v634_v47  ;;  %v640_v60 = vpack.c.bf16 %v595_v54, %v594_v53  ;;  %vm485_vm8 = vweird.f32 %v906_v56 }
  0xc0   : > { %v452_v21 = vmul.f32 %v1266_v63, %v1266_v63  ;;  %vm486_vm10 = vmor %vm484_vm9, %vm485_vm8  ;;  %v453_v27 = vmul.f32 %v1268_v10, %v1268_v10 }
  0xc1   : > { %v480_v62 = vmul.f32 %v906_v56, %v479_v58  ;;  %841 = vmatmul.msk.bf16.vlgmr.msra.gmra.mxu2 %vm301_vm0, %v645_v59  ;;  %845 = vmatmul.msk.bf16.vlgmr.msra.gmra.mxu3 %vm301_vm0, %v640_v60 }
  0xc3   : > { %v481_v2 = vmul.f32 0.5, %v480_v62  ;;  %v418_v4 = vpop.xlane.xlu1 %417  ;;  %v389_v6 = vpop.xlane.xlu0 %388 }
  0xc4   : > { %v908_v9 = vpop.eup %907  ;;  %v428_v11 = vadd.f32 %v418_v4, %v386_v46  ;;  %v559_v46 = vsub.f32 %v1118_v19, %v1223_v3 }
  0xc5   : > { %v482_v15 = vsub.f32 1.5, %v481_v2  ;;  %v489_v8 = vmul.f32 %v908_v9, %v471_v45  ;;  %v421_v16 = vpop.xlane.xlu2 %420  ;;  %vm495_vm11 = vweird.f32 %v908_v9 }
  0xc6   : > { %v444_v17 = vmul.f32 0.0625, %v428_v11  ;;  %v429_v22 = vadd.f32 %v421_v16, %v389_v6  ;;  %vm496_vm13 = vmor %vm494_vm12, %vm495_vm11 }
  0xc7   : > { %v483_v24 = vmul.f32 %v906_v56, %v482_v15  ;;  %v490_v25 = vmul.f32 %v908_v9, %v489_v8 }
  0xc8   : > { %v460_v26 = vsub.f32 %v444_v17, %v452_v21  ;;  %v445_v1 = vmul.f32 0.0625, %v429_v22 }
  0xc9   : > { %v491_v28 = vmul.f32 0.5, %v490_v25  ;;  %v487_v0 = vsel %vm486_vm10, %v906_v56, %v483_v24 }
  0xca   : > { %v468_v5 = vmax.f32 %v460_v26, 0.0  ;;  %v461_v33 = vsub.f32 %v445_v1, %v453_v27  ;;  %v606_v41 = vmul.f32 %v598_v12, %v487_v0  ;;  %v566_v43 = vmul.f32 %v558_v13, %v487_v0 }
  0xcb   : > { %v492_v34 = vsub.f32 1.5, %v491_v28  ;;  %v313_v23 = vpop.xlane.xlu1 %312  ;;  %v310_v38 = vpop.xlane.xlu0 %309  ;;  %v564_v1 = vsub.f32 %v1141_v31, %v1266_v63  ;;  %v604_v28 = vsub.f32 %v1155_v37, %v1266_v63  ;;  %v605_v31 = vsub.f32 %v1152_v36, %v1268_v10 }
  0xcc   : > { %v476_v39 = vadd.f32 1e-05, %v468_v5  ;;  %v469_v40 = vmax.f32 %v461_v33, 0.0  ;;  %v618_v47 = vmul.f32 %v1239_v29, %v606_v41  ;;  %v578_v54 = vmul.f32 %v1244_v30, %v566_v43 }
  0xcd   : > { %v493_v42 = vmul.f32 %v908_v9, %v492_v34  ;;  %v334_v52 = vpop.xlane.xlu2 %333  ;;  %v565_v43 = vsub.f32 %v1144_v32, %v1268_v10 }
  0xce   : > { %909 = vrsqrt.f32 %v476_v39  ;;  %v477_v18 = vadd.f32 1e-05, %v469_v40  ;;  %v630_v59 = vadd.f32 %v1249_v7, %v618_v47  ;;  %v590_v60 = vadd.f32 %v1254_v35, %v578_v54 }
  0xcf   : > { %v497_v14 = vsel %vm496_vm13, %v908_v9, %v493_v42  ;;  %v352_v2 = vadd.f32 %v334_v52, %v310_v38  ;;  %vm544_vm15 = vweird.f32 %v476_v39 }
  0xd0   : > { %911 = vrsqrt.f32 %v477_v18  ;;  %v607_v51 = vmul.f32 %v599_v44, %v497_v14  ;;  %v567_v53 = vmul.f32 %v559_v46, %v497_v14  ;;  %vm554_vm3 = vweird.f32 %v477_v18 }
  0xd1   : > { %v1292_v21 = vmul.f32 0.0625, %v352_v2 }
  0xd2   : > { %v619_v45 = vmul.f32 %v1239_v29, %v607_v51  ;;  %v579_v20 = vmul.f32 %v1244_v30, %v567_v53 }
  0xd3   : > { %v374_v56 = vpop.xlane.xlu1 %373  ;;  %v337_v57 = vpop.xlane.xlu0 %336  ;;  %v448_v34 = vmul.f32 %v1292_v21, %v1292_v21 }
  0xd4   : > { %v910_v58 = vpop.eup %909  ;;  %v631_v19 = vadd.f32 %v1249_v7, %v619_v45  ;;  %v591_v61 = vadd.f32 %v1254_v35, %v579_v20  ;;  %v353_v4 = vadd.f32 %v337_v57, %v313_v23 }
  0xd5   : > { %v539_v3 = vmul.f32 %v910_v58, %v476_v39  ;;  %v377_v17 = vpop.xlane.xlu2 %376  ;;  %vm545_vm14 = vweird.f32 %v910_v58 }
  0xd6   : > { %v912_v62 = vpop.eup %911  ;;  %v643_v6 = vpack.c.bf16 %v631_v19, %v630_v59  ;;  %v638_v15 = vpack.c.bf16 %v591_v61, %v590_v60  ;;  %v1294_v22 = vmul.f32 0.0625, %v353_v4  ;;  %vm546_vm2 = vmor %vm544_vm15, %vm545_vm14 }
  0xd7   : > { %v540_v9 = vmul.f32 %v910_v58, %v539_v3  ;;  %v549_v11 = vmul.f32 %v912_v62, %v477_v18  ;;  %vm555_vm1 = vweird.f32 %v912_v62 }
  0xd8   : > { %839 = vmatmul.msk.bf16.vlgmr.msra.gmra.mxu0 %vm301_vm0, %v643_v6  ;;  %843 = vmatmul.msk.bf16.vlgmr.msra.gmra.mxu1 %vm301_vm0, %v638_v15  ;;  %v449_v23 = vmul.f32 %v1294_v22, %v1294_v22  ;;  %vm556_vm4 = vmor %vm554_vm3, %vm555_vm1  ;;  %v560_v15 = vsub.f32 %v1177_v49, %v1292_v21 }
  0xd9   : > { %v541_v8 = vmul.f32 0.5, %v540_v9  ;;  %v550_v16 = vmul.f32 %v912_v62, %v549_v11 }
  0xdb   : > { %v542_v24 = vsub.f32 1.5, %v541_v8  ;;  %v551_v25 = vmul.f32 0.5, %v550_v16  ;;  %v409_v26 = vpop.xlane.xlu1 %408  ;;  %v406_v27 = vpop.xlane.xlu0 %405  ;;  %v600_v8 = vsub.f32 %v1180_v50, %v1292_v21 }
  0xdc   : > { %v424_v0 = vadd.f32 %v406_v27, %v374_v56  ;;  %v425_v12 = vadd.f32 %v409_v26, %v377_v17  ;;  %v561_v17 = vsub.f32 %v1174_v48, %v1294_v22 }
  0xdd   : > { %v543_v5 = vmul.f32 %v910_v58, %v542_v24  ;;  %v552_v33 = vsub.f32 1.5, %v551_v25  ;;  %v601_v24 = vsub.f32 %v1191_v55, %v1294_v22 }
  0xde   : > { %v440_v13 = vmul.f32 0.0625, %v424_v0  ;;  %v441_v38 = vmul.f32 0.0625, %v425_v12 }
  0xdf   : > { %v553_v40 = vmul.f32 %v912_v62, %v552_v33  ;;  %v547_v37 = vsel %vm546_vm2, %v910_v58, %v543_v5 }
  0xe0   : > { %v456_v63 = vsub.f32 %v440_v13, %v448_v34  ;;  %v457_v39 = vsub.f32 %v441_v38, %v449_v23  ;;  %v612_v41 = vmul.f32 %v604_v28, %v547_v37  ;;  %v572_v42 = vmul.f32 %v564_v1, %v547_v37 }
  0xe1   : > { %v557_v44 = vsel %vm556_vm4, %v912_v62, %v553_v40 }
  0xe2   : > { %v464_v46 = vmax.f32 %v456_v63, 0.0  ;;  %v465_v14 = vmax.f32 %v457_v39, 0.0  ;;  %v613_v51 = vmul.f32 %v605_v31, %v557_v44  ;;  %v624_v47 = vmul.f32 %v1239_v29, %v612_v41 }
  0xe3   : > { %v573_v52 = vmul.f32 %v565_v43, %v557_v44  ;;  %v584_v36 = vmul.f32 %v1244_v30, %v572_v42 }
  0xe4   : > { %v472_v53 = vadd.f32 1e-05, %v464_v46  ;;  %v473_v18 = vadd.f32 1e-05, %v465_v14  ;;  %v625_v54 = vmul.f32 %v1239_v29, %v613_v51  ;;  %v636_v56 = vadd.f32 %v1249_v7, %v624_v47 }
  0xe5   : > { %v585_v45 = vmul.f32 %v1244_v30, %v573_v52  ;;  %v596_v10 = vadd.f32 %v1254_v35, %v584_v36 }
  0xe6   : > { %913 = vrsqrt.f32 %v472_v53  ;;  %v637_v32 = vadd.f32 %v1249_v7, %v625_v54  ;;  %vm504_vm7 = vweird.f32 %v472_v53  ;;  %vm514_vm9 = vweird.f32 %v473_v18 }
  0xe7   : > { %915 = vrsqrt.f32 %v473_v18  ;;  %v597_v57 = vadd.f32 %v1254_v35, %v585_v45 }
  0xe8   : > { %v646_v20 = vpack.c.bf16 %v637_v32, %v636_v56 }
  0xe9   : > { %v641_v58 = vpack.c.bf16 %v597_v57, %v596_v10 }
  0xea   : > { %842 = vmatmul.msk.bf16.gmra.mxu2 %vm301_vm0, %v646_v20 }
  0xeb   : > { %846 = vmatmul.msk.bf16.gmra.mxu3 %vm301_vm0, %v641_v58 }
  0xec   : > { %v914_v59 = vpop.eup %913 }
  0xed   : > { %v916_v19 = vpop.eup %915  ;;  %v499_v3 = vmul.f32 %v914_v59, %v472_v53  ;;  %vm505_vm5 = vweird.f32 %v914_v59 }
  0xee   : > { %v509_v60 = vmul.f32 %v916_v19, %v473_v18  ;;  %vm515_vm6 = vweird.f32 %v916_v19  ;;  %vm506_vm8 = vmor %vm504_vm7, %vm505_vm5 }
  0xef   : > { %v500_v61 = vmul.f32 %v914_v59, %v499_v3  ;;  %vm516_vm10 = vmor %vm514_vm9, %vm515_vm6 }
  0xf0   : > { %v510_v62 = vmul.f32 %v916_v19, %v509_v60 }
  0xf1   : > { %v501_v2 = vmul.f32 0.5, %v500_v61 }
  0xf2   : > { %v511_v4 = vmul.f32 0.5, %v510_v62 }
  0xf3   : > { %v502_v6 = vsub.f32 1.5, %v501_v2 }
  0xf4   : > { %v512_v9 = vsub.f32 1.5, %v511_v4 }
  0xf5   : > { %v503_v11 = vmul.f32 %v914_v59, %v502_v6 }
  0xf6   : > { %v513_v16 = vmul.f32 %v916_v19, %v512_v9 }
  0xf7   : > { %v507_v25 = vsel %vm506_vm8, %v914_v59, %v503_v11 }
  0xf8   : > { %v517_v26 = vsel %vm516_vm10, %v916_v19, %v513_v16  ;;  %v608_v27 = vmul.f32 %v600_v8, %v507_v25  ;;  %v568_v1 = vmul.f32 %v560_v15, %v507_v25 }
  0xf9   : > { %v609_v49 = vmul.f32 %v601_v24, %v517_v26  ;;  %v569_v28 = vmul.f32 %v561_v17, %v517_v26 }
  0xfa   : > { %v620_v50 = vmul.f32 %v1239_v29, %v608_v27  ;;  %v580_v21 = vmul.f32 %v1244_v30, %v568_v1 }
  0xfb   : > { %v621_v0 = vmul.f32 %v1239_v29, %v609_v49  ;;  %v581_v48 = vmul.f32 %v1244_v30, %v569_v28 }
  0xfc   : > { %v632_v12 = vadd.f32 %v1249_v7, %v620_v50  ;;  %v592_v55 = vadd.f32 %v1254_v35, %v580_v21 }
  0xfd   : > { %v633_v22 = vadd.f32 %v1249_v7, %v621_v0  ;;  %v593_v5 = vadd.f32 %v1254_v35, %v581_v48 }
  0xff   : > { %v644_v33 = vpack.c.bf16 %v633_v22, %v632_v12  ;;  %v639_v13 = vpack.c.bf16 %v593_v5, %v592_v55 }
 0x101   : > { %840 = vmatmul.msk.bf16.gmra.mxu0 %vm301_vm0, %v644_v33  ;;  %844 = vmatmul.msk.bf16.gmra.mxu1 %vm301_vm0, %v639_v13 }
 0x144   : > { %v683_v29 = vpop.f32.mrf.mxu2  ;;  %v727_v34 = vpop.f32.mrf.mxu3 }
 0x145   : > { %v728_v30 = vadd.f32 %v727_v34, %v683_v29 }
 0x147   : > { %741 = vst [vmem:[%s1339_s18 + $0x20] sm:$0xff] %v728_v30 }
 0x14c   : > { %v685_v7 = vpop.f32.mrf.mxu2  ;;  %v729_v35 = vpop.f32.mrf.mxu3 }
 0x14d   : > { %v730_v23 = vadd.f32 %v729_v35, %v685_v7 }
 0x14f   : > { %742 = vst [vmem:[%s1339_s18 + $0x28] sm:$0xff] %v730_v23 }
 0x155   : > { %v673_v38 = vpop.f32.mrf.mxu0  ;;  %v717_v31 = vpop.f32.mrf.mxu1 }
 0x156   : > { %v718_v40 = vadd.f32 %v717_v31, %v673_v38 }
 0x158   : > { %737 = vst [vmem:[%s1339_s18] sm:$0xff] %v718_v40 }
 0x15d   : > { %v675_v37 = vpop.f32.mrf.mxu0  ;;  %v719_v63 = vpop.f32.mrf.mxu1 }
 0x15e   : > { %v720_v39 = vadd.f32 %v719_v63, %v675_v37 }
 0x160   : > { %738 = vst [vmem:[%s1339_s18 + $0x8] sm:$0xff] %v720_v39 }
 0x16d   : > { %v688_v41 = vpop.f32.mrf.mxu2 }
 0x16e   : > { %v732_v42 = vpop.f32.mrf.mxu3 }
 0x16f   : > { %v733_v43 = vadd.f32 %v732_v42, %v688_v41 }
 0x171   : > { %743 = vst [vmem:[%s1339_s18 + $0x30] sm:$0xff] %v733_v43 }
 0x175   : > { %v690_v44 = vpop.f32.mrf.mxu2 }
 0x176   : > { %v734_v46 = vpop.f32.mrf.mxu3 }
 0x177   : > { %v735_v14 = vadd.f32 %v734_v46, %v690_v44 }
 0x179   : > { %744 = vst [vmem:[%s1339_s18 + $0x38] sm:$0xff] %v735_v14 }
 0x17e   : > { %v678_v51 = vpop.f32.mrf.mxu0  ;;  %v722_v47 = vpop.f32.mrf.mxu1 }
 0x17f   : > { %v723_v52 = vadd.f32 %v722_v47, %v678_v51 }
 0x181   : > { %739 = vst [vmem:[%s1339_s18 + $0x10] sm:$0xff] %v723_v52 }
 0x186   : > { %v680_v36 = vpop.f32.mrf.mxu0  ;;  %v724_v53 = vpop.f32.mrf.mxu1 }
 0x187   : > { %v725_v18 = vadd.f32 %v724_v53, %v680_v36 }
 0x189   : > { %740 = vst [vmem:[%s1339_s18 + $0x18] sm:$0xff] %v725_v18 }
 0x18a   : > { %944 = shalt.err (!%p941_p3)
}
 0x18b   : > { %s981_s16 = smov 128   ;;  %s982_s18 = smov 8  }
 0x18c   : > { %856 = dma.vmem_to_hbm [thread:$0]  (%p1061_p5), %s759_s23, 1024, %s761_s29, %s746_s8, %s981_s16, %s981_s16, %s982_s18  }
 0x18d PF: > { %p862_p4 = scmp.ge.s32.totalorder %s979_s27, 2  ;;  %s775_s20 = sand.u32 1, %s967_s24  }
 0x18e   : > { %s776_s21 = scalar_lea.sflag [#allocation3], %s775_s20 }
 0x18f   : > { %p859_p7 = pnand %p862_p4, %p1065_p6 }
 0x191   : > { %p860_p8 = pneg %p859_p7 }
 0x193   : > { %962 = dma.done.wait (%p860_p8), %s776_s21, 1024  }
 0x194   : > { %964 = vsyncadd (%p860_p8), %s776_s21, 4294966272  ;;  %p17_p9 = scmp.ge.s32.totalorder %s1048_s30, 4   ;;  %s1393_s24 = smov %s971_s25 }
 0x195   : > { %s1394_s25 = smov %s975_s26  ;;  %s1395_s26 = smov %s1059_s10 }
 0x196   : > { %s1396_s27 = smov %s1048_s30  ;;  %19 = sbr.rel (!%p17_p9) target bundleno = 3 (0x3), region = 84 }
 0x19b   :  { %782 = vsyncpa [#allocation3], 1 }
 0x19c   :  { %784 = vsyncpa [#allocation3 + $0x1], 1 }

// kernel: tpu_custom_call.1
= control target key start
LH: loop header
LB: loop body
LE: loop exit
PB: predicated region body
PF: predicated region fallthrough
CT: control target
= control target key end

     0   :  { %12 = vsyncpa [#allocation3], 0  ;;  %s1383_s0 = inlined_call_operand.vmem [shape: f32[16,2,8,8], index: 0, kind: input, shape index: {}]   ;;  %s1384_s1 = inlined_call_operand.vmem [shape: f32[1,8], index: 1, kind: input, shape index: {}]   ;;  %s1385_s2 = inlined_call_operand.vmem [shape: f32[1,8], index: 2, kind: input, shape index: {}]   ;;  %s1386_s3 = inlined_call_operand.vmem [shape: f32[1,8], index: 3, kind: input, shape index: {}]   ;;  %s1387_s4 = inlined_call_operand.vmem [shape: f32[1,8], index: 4, kind: input, shape index: {}]   ;;  %s1388_s5 = inlined_call_operand.vmem [shape: bf16[8,128], index: 5, kind: input, shape index: {}]   ;;  %s1389_s6 = inlined_call_operand.vmem [shape: bf16[8,128], index: 6, kind: input, shape index: {}]   ;;  %s1390_s7 = inlined_call_operand.hbm [shape: f32[128,128], index: 7, kind: output, shape index: {}]  }
   0x1   :  { %14 = vsyncpa [#allocation3 + $0x1], 0  ;;  %s1023_s24 = smov 0   ;;  %s1025_s25 = smov 0  }
   0x2   :  { %s1027_s26 = smov 0   ;;  %s1029_s27 = smov 0  }
   0x3 LB: > { %s1044_s28 = sadd.s32 4294967295, %s979_s27   ;;  %s823_s29 = sadd.s32 4294967294, %s979_s27   ;;  %s979_s27 = sphi %s1029_s27, %s1396_s27   ;;  %s975_s26 = sphi %s1027_s26, %s1395_s26   ;;  %s971_s25 = sphi %s1025_s25, %s1394_s25   ;;  %s967_s24 = sphi %s1023_s24, %s1393_s24  }
   0x4   : > { %s1048_s30 = sadd.s32 1, %s979_s27   ;;  %s179_s8 = sadd.s32 1, %s975_s26 }
   0x5   : > { %s176_s9 = ssub.s32 %s979_s27, %s1048_s30  ;;  %p189_p0 = scmp.ne.s32.totalorder %s975_s26, %s971_s25 }
   0x6   : > { %p177_p1 = scmp.eq.s32.totalorder %s176_s9, 0  ;;  %p190_p2 = scmp.eq.s32.totalorder %s1044_s28, 1 }
   0x7   : > { %p195_p3 = scmp.ne.s32.totalorder %s971_s25, %s967_s24  ;;  %p196_p4 = scmp.eq.s32.totalorder %s823_s29, 1 }
   0x8   : > { %s1059_s10 = scalar_select %p177_p1, %s975_s26, %s179_s8  }
   0x9   : > { %p1061_p5 = por %p190_p2, %p189_p0  ;;  %p1065_p6 = por %p196_p4, %p195_p3 }
   0xa   : > { %p826_p7 = scmp.ge.s32.totalorder %s979_s27, 1  ;;  %p242_p8 = scmp.lt.s32.totalorder %s979_s27, 3 }
   0xc   : > { %p243_p9 = pnand %p826_p7, %p242_p8 }
   0xd   : > { %s828_s13 = sshll.u32 (!%p243_p9), %s1044_s28, 3  ;;  %s272_s16 = sand.u32 (!%p243_p9), 1, %s971_s25  }
   0xe   : > { %246 = sbr.rel (%p243_p9) target bundleno = 397 (0x18d), region = 48  ;;  %p276_p10 = scmp.lt.s32.totalorder (!%p243_p9), %s828_s13, 15 }
   0xf   : > { %s853_s19 = sshll.u32 (!%p243_p9), %s1044_s28, 6  ;;  %s746_s8 = scalar_lea.sflag (!%p243_p9), [#allocation3], %s272_s16 }
  0x10   : > { %s757_s22 = scalar_lea.hbm (!%p243_p9), %s1390_s7, %s853_s19  ;;  %s937_s15 = scalar_lea.hbm (!%p243_p9), %s1390_s7, 128 }
  0x11   : > { %s760_s29 = sshll.u32 (!%p243_p9), %s757_s22, 4  ;;  %s761_s29 = int_to_ptr.hbm [resolvable:$true] %s760_s29 }
  0x12   : > { %s931_s28 = sshra.s32 (!%p243_p9), %s761_s29, 4  ;;  %s932_s28 = int_to_ptr.hbm [resolvable:$true] %s931_s28 }
  0x13   : > { %s1398_s13 = smov (!%p276_p10, %s828_s13), 15  ;;  %vm301_vm0 = vcmask 64512   ;;  %vm660_vm1 = vcmask 1043456   ;;  %s933_s9 = scalar_lea.hbm %s932_s28, 64 }
  0x14   : > { %s852_s14 = sshll.u32 %s1398_s13, 4  ;;  %p934_p11 = scmp.ne.s32.totalorder %s932_s28, %s933_s9 }
  0x15   : > { %s1075_s17 = scalar_lea.vmem %s1383_s0, %s852_s14  ;;  %p938_p0 = scmp.lt.s32.totalorder %s932_s28, %s1390_s7 }
  0x16   : > { %v1078_v0 = vld [vmem:[%s1075_s17 + $0x48] sm:$0xff]  ;;  %v1081_v1 = vld [vmem:[%s1075_s17 + $0x40] sm:$0xff]  ;;  %v1090_v5 = vld [vmem:[%s1075_s17 + $0x50] sm:$0xff]  ;;  %p935_p12 = pnand %p934_p11, %p1061_p5  ;;  %p939_p1 = scmp.lt.s32.totalorder %s937_s15, %s933_s9 }
  0x17   : > { %v338_v2 = vsel %vm301_vm0, %v1078_v0, 0.0  ;;  %v314_v3 = vsel %vm301_vm0, %v1081_v1, 0.0  ;;  %v362_v4 = vmul.f32 %v1081_v1, %v1081_v1  ;;  %v1094_v7 = vld [vmem:[%s1075_s17 + $0x58] sm:$0xff]  ;;  %v363_v8 = vmul.f32 %v1090_v5, %v1090_v5  ;;  %v1108_v14 = vld [vmem:[%s1075_s17] sm:$0xff]  ;;  %v1115_v18 = vld [vmem:[%s1075_s17 + $0x8] sm:$0xff] }
  0x18   : > { %339 = vadd.xlane.f32.xlu1 %v338_v2  ;;  %315 = vadd.xlane.f32.xlu0 %v314_v3  ;;  %v341_v9 = vsel %vm301_vm0, %v1094_v7, 0.0  ;;  %v317_v10 = vsel %vm301_vm0, %v1090_v5, 0.0  ;;  %v395_v12 = vmul.f32 %v1094_v7, %v1094_v7  ;;  %v394_v13 = vmul.f32 %v1078_v0, %v1078_v0  ;;  %v1118_v19 = vld [vmem:[%s1075_s17 + $0x10] sm:$0xff]  ;;  %v1121_v20 = vld [vmem:[%s1075_s17 + $0x18] sm:$0xff]  ;;  %v1141_v31 = vld [vmem:[%s1075_s17 + $0x60] sm:$0xff]  ;;  %p936_p13 = pneg %p935_p12  ;;  %p940_p2 = por %p939_p1, %p938_p0 }
  0x19   : > { %v378_v6 = vsel %vm301_vm0, %v362_v4, 0.0  ;;  %v381_v11 = vsel %vm301_vm0, %v363_v8, 0.0  ;;  %v302_v17 = vsel %vm301_vm0, %v1108_v14, 0.0  ;;  %v326_v21 = vsel %vm301_vm0, %v1115_v18, 0.0  ;;  %v1144_v32 = vld [vmem:[%s1075_s17 + $0x70] sm:$0xff]  ;;  %v1152_v36 = vld [vmem:[%s1075_s17 + $0x78] sm:$0xff] }
  0x1a   : > { %379 = vadd.xlane.f32.xlu2 %v378_v6  ;;  %v413_v15 = vsel %vm301_vm0, %v395_v12, 0.0  ;;  %v410_v16 = vsel %vm301_vm0, %v394_v13, 0.0  ;;  %v305_v22 = vsel %vm301_vm0, %v1118_v19, 0.0  ;;  %v329_v23 = vsel %vm301_vm0, %v1121_v20, 0.0  ;;  %v1155_v37 = vld [vmem:[%s1075_s17 + $0x68] sm:$0xff]  ;;  %v1174_v48 = vld [vmem:[%s1075_s17 + $0x30] sm:$0xff]  ;;  %p941_p3 = pnand %p940_p2, %p936_p13 }
  0x1b   : > { %v359_v24 = vmul.f32 %v1118_v19, %v1118_v19  ;;  %v358_v25 = vmul.f32 %v1108_v14, %v1108_v14  ;;  %v390_v26 = vmul.f32 %v1115_v18, %v1115_v18  ;;  %v391_v30 = vmul.f32 %v1121_v20, %v1121_v20  ;;  %v1177_v49 = vld [vmem:[%s1075_s17 + $0x20] sm:$0xff]  ;;  %v1180_v50 = vld [vmem:[%s1075_s17 + $0x28] sm:$0xff]  ;;  %v1191_v55 = vld [vmem:[%s1075_s17 + $0x38] sm:$0xff]  ;;  %s827_s17 = sshll.u32 %s272_s16, 6 }
  0x1c   : > { %v320_v33 = vsel %vm301_vm0, %v1141_v31, 0.0  ;;  %v323_v35 = vsel %vm301_vm0, %v1144_v32, 0.0  ;;  %v364_v38 = vmul.f32 %v1141_v31, %v1141_v31  ;;  %v347_v39 = vsel %vm301_vm0, %v1152_v36, 0.0  ;;  %s1339_s18 = scalar_lea.vmem [#allocation2], %s827_s17 }
  0x1d   : > { %v369_v27 = vsel %vm301_vm0, %v359_v24, 0.0  ;;  %v366_v28 = vsel %vm301_vm0, %v358_v25, 0.0  ;;  %v398_v29 = vsel %vm301_vm0, %v390_v26, 0.0  ;;  %v401_v34 = vsel %vm301_vm0, %v391_v30, 0.0  ;;  %s758_s23 = sshll.u32 %s1339_s18, 4  ;;  %s759_s23 = int_to_ptr.vmem [resolvable:$true] %s758_s23 }
  0x1e   : > { %v344_v40 = vsel %vm301_vm0, %v1155_v37, 0.0  ;;  %v384_v41 = vsel %vm301_vm0, %v364_v38, 0.0  ;;  %v396_v42 = vmul.f32 %v1155_v37, %v1155_v37  ;;  %v365_v43 = vmul.f32 %v1144_v32, %v1144_v32 }
  0x1f   : > { %v397_v44 = vmul.f32 %v1152_v36, %v1152_v36  ;;  %v311_v51 = vsel %vm301_vm0, %v1174_v48, 0.0  ;;  %v308_v52 = vsel %vm301_vm0, %v1177_v49, 0.0  ;;  %v332_v53 = vsel %vm301_vm0, %v1180_v50, 0.0 }
  0x20   : > { %342 = vadd.xlane.f32.xlu1 %v341_v9  ;;  %318 = vadd.xlane.f32.xlu0 %v317_v10  ;;  %v416_v45 = vsel %vm301_vm0, %v396_v42, 0.0  ;;  %v387_v46 = vsel %vm301_vm0, %v365_v43, 0.0  ;;  %v360_v54 = vmul.f32 %v1177_v49, %v1177_v49  ;;  %v361_v56 = vmul.f32 %v1174_v48, %v1174_v48 }
  0x21   : > { %v419_v47 = vsel %vm301_vm0, %v397_v44, 0.0  ;;  %v335_v58 = vsel %vm301_vm0, %v1191_v55, 0.0  ;;  %v393_v60 = vmul.f32 %v1191_v55, %v1191_v55  ;;  %v392_v61 = vmul.f32 %v1180_v50, %v1180_v50 }
  0x22   : > { %382 = vadd.xlane.f32.xlu2 %v381_v11  ;;  %v372_v57 = vsel %vm301_vm0, %v360_v54, 0.0  ;;  %v375_v59 = vsel %vm301_vm0, %v361_v56, 0.0 }
  0x23   : > { %v407_v62 = vsel %vm301_vm0, %v393_v60, 0.0  ;;  %v404_v63 = vsel %vm301_vm0, %v392_v61, 0.0 }
  0x28   : > { %414 = vadd.xlane.f32.xlu1 %v413_v15  ;;  %411 = vadd.xlane.f32.xlu0 %v410_v16 }
  0x2a   : > { %303 = vadd.xlane.f32.xlu2 %v302_v17 }
  0x30   : > { %327 = vadd.xlane.f32.xlu1 %v326_v21  ;;  %306 = vadd.xlane.f32.xlu0 %v305_v22  ;;  %v647_v22 = vld [vmem:[%s1389_s6] sm:$0xf] }
  0x31   : > { %v662_v25 = vsel %vm660_vm1, %v647_v22, 0 }
  0x32   : > { %330 = vadd.xlane.f32.xlu2 %v329_v23  ;;  %v642_v23 = vld [vmem:[%s1388_s5] sm:$0xf]  ;;  %854 = vmatpush.bf16.msra.mxu2 %v662_v25 }
  0x33   : > { %v706_v26 = vsel %vm660_vm1, %v642_v23, 0  ;;  %671 = vmatpush.bf16.msra.mxu0 %v662_v25 }
  0x34   : > { %855 = vmatpush.bf16.msra.mxu3 %v706_v26  ;;  %715 = vmatpush.bf16.msra.mxu1 %v706_v26 }
  0x38   : > { %370 = vadd.xlane.f32.xlu1 %v369_v27  ;;  %367 = vadd.xlane.f32.xlu0 %v366_v28 }
  0x3a   : > { %399 = vadd.xlane.f32.xlu2 %v398_v29 }
  0x40   : > { %321 = vadd.xlane.f32.xlu1 %v320_v33  ;;  %402 = vadd.xlane.f32.xlu0 %v401_v34 }
  0x42   : > { %324 = vadd.xlane.f32.xlu2 %v323_v35 }
  0x48   : > { %348 = vadd.xlane.f32.xlu1 %v347_v39  ;;  %345 = vadd.xlane.f32.xlu0 %v344_v40 }
  0x4a   : > { %385 = vadd.xlane.f32.xlu2 %v384_v41 }
  0x50   : > { %417 = vadd.xlane.f32.xlu1 %v416_v45  ;;  %388 = vadd.xlane.f32.xlu0 %v387_v46 }
  0x52   : > { %420 = vadd.xlane.f32.xlu2 %v419_v47 }
  0x58   : > { %312 = vadd.xlane.f32.xlu1 %v311_v51  ;;  %309 = vadd.xlane.f32.xlu0 %v308_v52 }
  0x5a   : > { %333 = vadd.xlane.f32.xlu2 %v332_v53 }
  0x60   : > { %373 = vadd.xlane.f32.xlu1 %v372_v57  ;;  %336 = vadd.xlane.f32.xlu0 %v335_v58 }
  0x62   : > { %376 = vadd.xlane.f32.xlu2 %v375_v59 }
  0x68   : > { %408 = vadd.xlane.f32.xlu1 %v407_v62  ;;  %405 = vadd.xlane.f32.xlu0 %v404_v63 }
  0x8b   : > { %v340_v2 = vpop.xlane.xlu1 %339  ;;  %v316_v3 = vpop.xlane.xlu0 %315 }
  0x8c   : > { %v354_v10 = vadd.f32 %v340_v2, %v316_v3 }
  0x8d   : > { %v380_v4 = vpop.xlane.xlu2 %379 }
  0x8e   : > { %v1205_v12 = vmul.f32 0.0625, %v354_v10 }
  0x90   : > { %v450_v29 = vmul.f32 %v1205_v12, %v1205_v12  ;;  %v602_v26 = vsub.f32 %v1078_v0, %v1205_v12 }
  0x93   : > { %v343_v6 = vpop.xlane.xlu1 %342  ;;  %v319_v8 = vpop.xlane.xlu0 %318 }
  0x94   : > { %v355_v11 = vadd.f32 %v343_v6, %v319_v8 }
  0x95   : > { %v383_v9 = vpop.xlane.xlu2 %382 }
  0x96   : > { %v1207_v13 = vmul.f32 0.0625, %v355_v11 }
  0x98   : > { %v451_v28 = vmul.f32 %v1207_v13, %v1207_v13 }
  0x9b   : > { %v415_v15 = vpop.xlane.xlu1 %414  ;;  %v412_v16 = vpop.xlane.xlu0 %411 }
  0x9c   : > { %v427_v17 = vadd.f32 %v415_v15, %v383_v9  ;;  %v426_v21 = vadd.f32 %v412_v16, %v380_v4  ;;  %v562_v16 = vsub.f32 %v1081_v1, %v1205_v12  ;;  %v603_v1 = vsub.f32 %v1094_v7, %v1207_v13  ;;  %v1249_v7 = vld [vmem:[%s1387_s4] ss:$0 sm:$0xff] }
  0x9d   : > { %v304_v24 = vpop.xlane.xlu2 %303 }
  0x9e   : > { %v443_v27 = vmul.f32 0.0625, %v427_v17  ;;  %v442_v30 = vmul.f32 0.0625, %v426_v21 }
  0xa0   : > { %v459_v33 = vsub.f32 %v443_v27, %v451_v28  ;;  %v458_v34 = vsub.f32 %v442_v30, %v450_v29  ;;  %v563_v27 = vsub.f32 %v1090_v5, %v1207_v13  ;;  %v1239_v29 = vld [vmem:[%s1386_s3] ss:$0 sm:$0xff] }
  0xa1   : > { %v1244_v30 = vld [vmem:[%s1384_s1] ss:$0 sm:$0xff] }
  0xa2   : > { %v467_v35 = vmax.f32 %v459_v33, 0.0  ;;  %v466_v38 = vmax.f32 %v458_v34, 0.0 }
  0xa3   : > { %v328_v39 = vpop.xlane.xlu1 %327  ;;  %v307_v40 = vpop.xlane.xlu0 %306 }
  0xa4   : > { %v475_v41 = vadd.f32 1e-05, %v467_v35  ;;  %v474_v42 = vadd.f32 1e-05, %v466_v38  ;;  %v350_v44 = vadd.f32 %v328_v39, %v304_v24  ;;  %v1254_v35 = vld [vmem:[%s1385_s2] ss:$0 sm:$0xff] }
  0xa5   : > { %v331_v43 = vpop.xlane.xlu2 %330 }
  0xa6   : > { %901 = vrsqrt.f32 %v475_v41  ;;  %v1219_v51 = vmul.f32 0.0625, %v350_v44  ;;  %v351_v57 = vadd.f32 %v331_v43, %v307_v40  ;;  %vm534_vm4 = vweird.f32 %v475_v41 }
  0xa7   : > { %903 = vrsqrt.f32 %v474_v42  ;;  %vm524_vm5 = vweird.f32 %v474_v42 }
  0xa8   : > { %v446_v61 = vmul.f32 %v1219_v51, %v1219_v51  ;;  %v1223_v3 = vmul.f32 0.0625, %v351_v57 }
  0xaa   : > { %v447_v25 = vmul.f32 %v1223_v3, %v1223_v3 }
  0xab   : > { %v371_v45 = vpop.xlane.xlu1 %370  ;;  %v368_v46 = vpop.xlane.xlu0 %367 }
  0xac   : > { %v902_v47 = vpop.eup %901 }
  0xad   : > { %v904_v52 = vpop.eup %903  ;;  %v529_v53 = vmul.f32 %v902_v47, %v475_v41  ;;  %v400_v54 = vpop.xlane.xlu2 %399  ;;  %vm535_vm2 = vweird.f32 %v902_v47 }
  0xae   : > { %v519_v56 = vmul.f32 %v904_v52, %v474_v42  ;;  %v422_v58 = vadd.f32 %v400_v54, %v368_v46  ;;  %vm525_vm3 = vweird.f32 %v904_v52  ;;  %vm536_vm6 = vmor %vm534_vm4, %vm535_vm2 }
  0xaf   : > { %v530_v59 = vmul.f32 %v902_v47, %v529_v53  ;;  %vm526_vm7 = vmor %vm524_vm5, %vm525_vm3 }
  0xb0   : > { %v520_v60 = vmul.f32 %v904_v52, %v519_v56  ;;  %v438_v62 = vmul.f32 0.0625, %v422_v58 }
  0xb1   : > { %v531_v63 = vmul.f32 0.5, %v530_v59 }
  0xb2   : > { %v521_v2 = vmul.f32 0.5, %v520_v60  ;;  %v454_v4 = vsub.f32 %v438_v62, %v446_v61 }
  0xb3   : > { %v532_v6 = vsub.f32 1.5, %v531_v63  ;;  %v322_v8 = vpop.xlane.xlu1 %321  ;;  %v403_v9 = vpop.xlane.xlu0 %402 }
  0xb4   : > { %v522_v10 = vsub.f32 1.5, %v521_v2  ;;  %v462_v11 = vmax.f32 %v454_v4, 0.0  ;;  %v423_v15 = vadd.f32 %v403_v9, %v371_v45 }
  0xb5   : > { %v533_v17 = vmul.f32 %v902_v47, %v532_v6  ;;  %v325_v21 = vpop.xlane.xlu2 %324 }
  0xb6   : > { %v523_v22 = vmul.f32 %v904_v52, %v522_v10  ;;  %v470_v23 = vadd.f32 1e-05, %v462_v11  ;;  %v439_v24 = vmul.f32 0.0625, %v423_v15 }
  0xb7   : > { %v537_v28 = vsel %vm536_vm6, %v902_v47, %v533_v17 }
  0xb8   : > { %905 = vrsqrt.f32 %v470_v23  ;;  %v455_v0 = vsub.f32 %v439_v24, %v447_v25  ;;  %v527_v12 = vsel %vm526_vm7, %v904_v52, %v523_v22  ;;  %v611_v33 = vmul.f32 %v603_v1, %v537_v28 }
  0xb9   : > { %v610_v5 = vmul.f32 %v602_v26, %v527_v12  ;;  %v570_v13 = vmul.f32 %v562_v16, %v527_v12  ;;  %v571_v34 = vmul.f32 %v563_v27, %v537_v28  ;;  %vm484_vm9 = vweird.f32 %v470_v23 }
  0xba   : > { %v463_v38 = vmax.f32 %v455_v0, 0.0  ;;  %v623_v42 = vmul.f32 %v1239_v29, %v611_v33  ;;  %v598_v12 = vsub.f32 %v1115_v18, %v1219_v51 }
  0xbb   : > { %v349_v39 = vpop.xlane.xlu1 %348  ;;  %v346_v40 = vpop.xlane.xlu0 %345  ;;  %v622_v41 = vmul.f32 %v1239_v29, %v610_v5  ;;  %v582_v43 = vmul.f32 %v1244_v30, %v570_v13  ;;  %v583_v44 = vmul.f32 %v1244_v30, %v571_v34  ;;  %v558_v13 = vsub.f32 %v1108_v14, %v1219_v51 }
  0xbc   : > { %v471_v45 = vadd.f32 1e-05, %v463_v38  ;;  %v635_v52 = vadd.f32 %v1249_v7, %v623_v42  ;;  %v356_v57 = vadd.f32 %v346_v40, %v322_v8  ;;  %v357_v61 = vadd.f32 %v349_v39, %v325_v21 }
  0xbd   : > { %v386_v46 = vpop.xlane.xlu2 %385  ;;  %v634_v47 = vadd.f32 %v1249_v7, %v622_v41  ;;  %v594_v53 = vadd.f32 %v1254_v35, %v582_v43  ;;  %v595_v54 = vadd.f32 %v1254_v35, %v583_v44  ;;  %v599_v44 = vsub.f32 %v1121_v20, %v1223_v3 }
  0xbe   : > { %v906_v56 = vpop.eup %905  ;;  %907 = vrsqrt.f32 %v471_v45  ;;  %v1266_v63 = vmul.f32 0.0625, %v356_v57  ;;  %v1268_v10 = vmul.f32 0.0625, %v357_v61  ;;  %vm494_vm12 = vweird.f32 %v471_v45 }
  0xbf   : > { %v479_v58 = vmul.f32 %v906_v56, %v470_v23  ;;  %v645_v59 = vpack.c.bf16 %v635_v52, %v634_v47  ;;  %v640_v60 = vpack.c.bf16 %v595_v54, %v594_v53  ;;  %vm485_vm8 = vweird.f32 %v906_v56 }
  0xc0   : > { %v452_v21 = vmul.f32 %v1266_v63, %v1266_v63  ;;  %vm486_vm10 = vmor %vm484_vm9, %vm485_vm8  ;;  %v453_v27 = vmul.f32 %v1268_v10, %v1268_v10 }
  0xc1   : > { %v480_v62 = vmul.f32 %v906_v56, %v479_v58  ;;  %841 = vmatmul.msk.bf16.vlgmr.msra.gmra.mxu2 %vm301_vm0, %v645_v59  ;;  %845 = vmatmul.msk.bf16.vlgmr.msra.gmra.mxu3 %vm301_vm0, %v640_v60 }
  0xc3   : > { %v481_v2 = vmul.f32 0.5, %v480_v62  ;;  %v418_v4 = vpop.xlane.xlu1 %417  ;;  %v389_v6 = vpop.xlane.xlu0 %388 }
  0xc4   : > { %v908_v9 = vpop.eup %907  ;;  %v428_v11 = vadd.f32 %v418_v4, %v386_v46  ;;  %v559_v46 = vsub.f32 %v1118_v19, %v1223_v3 }
  0xc5   : > { %v482_v15 = vsub.f32 1.5, %v481_v2  ;;  %v489_v8 = vmul.f32 %v908_v9, %v471_v45  ;;  %v421_v16 = vpop.xlane.xlu2 %420  ;;  %vm495_vm11 = vweird.f32 %v908_v9 }
  0xc6   : > { %v444_v17 = vmul.f32 0.0625, %v428_v11  ;;  %v429_v22 = vadd.f32 %v421_v16, %v389_v6  ;;  %vm496_vm13 = vmor %vm494_vm12, %vm495_vm11 }
  0xc7   : > { %v483_v24 = vmul.f32 %v906_v56, %v482_v15  ;;  %v490_v25 = vmul.f32 %v908_v9, %v489_v8 }
  0xc8   : > { %v460_v26 = vsub.f32 %v444_v17, %v452_v21  ;;  %v445_v1 = vmul.f32 0.0625, %v429_v22 }
  0xc9   : > { %v491_v28 = vmul.f32 0.5, %v490_v25  ;;  %v487_v0 = vsel %vm486_vm10, %v906_v56, %v483_v24 }
  0xca   : > { %v468_v5 = vmax.f32 %v460_v26, 0.0  ;;  %v461_v33 = vsub.f32 %v445_v1, %v453_v27  ;;  %v606_v41 = vmul.f32 %v598_v12, %v487_v0  ;;  %v566_v43 = vmul.f32 %v558_v13, %v487_v0 }
  0xcb   : > { %v492_v34 = vsub.f32 1.5, %v491_v28  ;;  %v313_v23 = vpop.xlane.xlu1 %312  ;;  %v310_v38 = vpop.xlane.xlu0 %309  ;;  %v564_v1 = vsub.f32 %v1141_v31, %v1266_v63  ;;  %v604_v28 = vsub.f32 %v1155_v37, %v1266_v63  ;;  %v605_v31 = vsub.f32 %v1152_v36, %v1268_v10 }
  0xcc   : > { %v476_v39 = vadd.f32 1e-05, %v468_v5  ;;  %v469_v40 = vmax.f32 %v461_v33, 0.0  ;;  %v618_v47 = vmul.f32 %v1239_v29, %v606_v41  ;;  %v578_v54 = vmul.f32 %v1244_v30, %v566_v43 }
  0xcd   : > { %v493_v42 = vmul.f32 %v908_v9, %v492_v34  ;;  %v334_v52 = vpop.xlane.xlu2 %333  ;;  %v565_v43 = vsub.f32 %v1144_v32, %v1268_v10 }
  0xce   : > { %909 = vrsqrt.f32 %v476_v39  ;;  %v477_v18 = vadd.f32 1e-05, %v469_v40  ;;  %v630_v59 = vadd.f32 %v1249_v7, %v618_v47  ;;  %v590_v60 = vadd.f32 %v1254_v35, %v578_v54 }
  0xcf   : > { %v497_v14 = vsel %vm496_vm13, %v908_v9, %v493_v42  ;;  %v352_v2 = vadd.f32 %v334_v52, %v310_v38  ;;  %vm544_vm15 = vweird.f32 %v476_v39 }
  0xd0   : > { %911 = vrsqrt.f32 %v477_v18  ;;  %v607_v51 = vmul.f32 %v599_v44, %v497_v14  ;;  %v567_v53 = vmul.f32 %v559_v46, %v497_v14  ;;  %vm554_vm3 = vweird.f32 %v477_v18 }
  0xd1   : > { %v1292_v21 = vmul.f32 0.0625, %v352_v2 }
  0xd2   : > { %v619_v45 = vmul.f32 %v1239_v29, %v607_v51  ;;  %v579_v20 = vmul.f32 %v1244_v30, %v567_v53 }
  0xd3   : > { %v374_v56 = vpop.xlane.xlu1 %373  ;;  %v337_v57 = vpop.xlane.xlu0 %336  ;;  %v448_v34 = vmul.f32 %v1292_v21, %v1292_v21 }
  0xd4   : > { %v910_v58 = vpop.eup %909  ;;  %v631_v19 = vadd.f32 %v1249_v7, %v619_v45  ;;  %v591_v61 = vadd.f32 %v1254_v35, %v579_v20  ;;  %v353_v4 = vadd.f32 %v337_v57, %v313_v23 }
  0xd5   : > { %v539_v3 = vmul.f32 %v910_v58, %v476_v39  ;;  %v377_v17 = vpop.xlane.xlu2 %376  ;;  %vm545_vm14 = vweird.f32 %v910_v58 }
  0xd6   : > { %v912_v62 = vpop.eup %911  ;;  %v643_v6 = vpack.c.bf16 %v631_v19, %v630_v59  ;;  %v638_v15 = vpack.c.bf16 %v591_v61, %v590_v60  ;;  %v1294_v22 = vmul.f32 0.0625, %v353_v4  ;;  %vm546_vm2 = vmor %vm544_vm15, %vm545_vm14 }
  0xd7   : > { %v540_v9 = vmul.f32 %v910_v58, %v539_v3  ;;  %v549_v11 = vmul.f32 %v912_v62, %v477_v18  ;;  %vm555_vm1 = vweird.f32 %v912_v62 }
  0xd8   : > { %839 = vmatmul.msk.bf16.vlgmr.msra.gmra.mxu0 %vm301_vm0, %v643_v6  ;;  %843 = vmatmul.msk.bf16.vlgmr.msra.gmra.mxu1 %vm301_vm0, %v638_v15  ;;  %v449_v23 = vmul.f32 %v1294_v22, %v1294_v22  ;;  %vm556_vm4 = vmor %vm554_vm3, %vm555_vm1  ;;  %v560_v15 = vsub.f32 %v1177_v49, %v1292_v21 }
  0xd9   : > { %v541_v8 = vmul.f32 0.5, %v540_v9  ;;  %v550_v16 = vmul.f32 %v912_v62, %v549_v11 }
  0xdb   : > { %v542_v24 = vsub.f32 1.5, %v541_v8  ;;  %v551_v25 = vmul.f32 0.5, %v550_v16  ;;  %v409_v26 = vpop.xlane.xlu1 %408  ;;  %v406_v27 = vpop.xlane.xlu0 %405  ;;  %v600_v8 = vsub.f32 %v1180_v50, %v1292_v21 }
  0xdc   : > { %v424_v0 = vadd.f32 %v406_v27, %v374_v56  ;;  %v425_v12 = vadd.f32 %v409_v26, %v377_v17  ;;  %v561_v17 = vsub.f32 %v1174_v48, %v1294_v22 }
  0xdd   : > { %v543_v5 = vmul.f32 %v910_v58, %v542_v24  ;;  %v552_v33 = vsub.f32 1.5, %v551_v25  ;;  %v601_v24 = vsub.f32 %v1191_v55, %v1294_v22 }
  0xde   : > { %v440_v13 = vmul.f32 0.0625, %v424_v0  ;;  %v441_v38 = vmul.f32 0.0625, %v425_v12 }
  0xdf   : > { %v553_v40 = vmul.f32 %v912_v62, %v552_v33  ;;  %v547_v37 = vsel %vm546_vm2, %v910_v58, %v543_v5 }
  0xe0   : > { %v456_v63 = vsub.f32 %v440_v13, %v448_v34  ;;  %v457_v39 = vsub.f32 %v441_v38, %v449_v23  ;;  %v612_v41 = vmul.f32 %v604_v28, %v547_v37  ;;  %v572_v42 = vmul.f32 %v564_v1, %v547_v37 }
  0xe1   : > { %v557_v44 = vsel %vm556_vm4, %v912_v62, %v553_v40 }
  0xe2   : > { %v464_v46 = vmax.f32 %v456_v63, 0.0  ;;  %v465_v14 = vmax.f32 %v457_v39, 0.0  ;;  %v613_v51 = vmul.f32 %v605_v31, %v557_v44  ;;  %v624_v47 = vmul.f32 %v1239_v29, %v612_v41 }
  0xe3   : > { %v573_v52 = vmul.f32 %v565_v43, %v557_v44  ;;  %v584_v36 = vmul.f32 %v1244_v30, %v572_v42 }
  0xe4   : > { %v472_v53 = vadd.f32 1e-05, %v464_v46  ;;  %v473_v18 = vadd.f32 1e-05, %v465_v14  ;;  %v625_v54 = vmul.f32 %v1239_v29, %v613_v51  ;;  %v636_v56 = vadd.f32 %v1249_v7, %v624_v47 }
  0xe5   : > { %v585_v45 = vmul.f32 %v1244_v30, %v573_v52  ;;  %v596_v10 = vadd.f32 %v1254_v35, %v584_v36 }
  0xe6   : > { %913 = vrsqrt.f32 %v472_v53  ;;  %v637_v32 = vadd.f32 %v1249_v7, %v625_v54  ;;  %vm504_vm7 = vweird.f32 %v472_v53  ;;  %vm514_vm9 = vweird.f32 %v473_v18 }
  0xe7   : > { %915 = vrsqrt.f32 %v473_v18  ;;  %v597_v57 = vadd.f32 %v1254_v35, %v585_v45 }
  0xe8   : > { %v646_v20 = vpack.c.bf16 %v637_v32, %v636_v56 }
  0xe9   : > { %v641_v58 = vpack.c.bf16 %v597_v57, %v596_v10 }
  0xea   : > { %842 = vmatmul.msk.bf16.gmra.mxu2 %vm301_vm0, %v646_v20 }
  0xeb   : > { %846 = vmatmul.msk.bf16.gmra.mxu3 %vm301_vm0, %v641_v58 }
  0xec   : > { %v914_v59 = vpop.eup %913 }
  0xed   : > { %v916_v19 = vpop.eup %915  ;;  %v499_v3 = vmul.f32 %v914_v59, %v472_v53  ;;  %vm505_vm5 = vweird.f32 %v914_v59 }
  0xee   : > { %v509_v60 = vmul.f32 %v916_v19, %v473_v18  ;;  %vm515_vm6 = vweird.f32 %v916_v19  ;;  %vm506_vm8 = vmor %vm504_vm7, %vm505_vm5 }
  0xef   : > { %v500_v61 = vmul.f32 %v914_v59, %v499_v3  ;;  %vm516_vm10 = vmor %vm514_vm9, %vm515_vm6 }
  0xf0   : > { %v510_v62 = vmul.f32 %v916_v19, %v509_v60 }
  0xf1   : > { %v501_v2 = vmul.f32 0.5, %v500_v61 }
  0xf2   : > { %v511_v4 = vmul.f32 0.5, %v510_v62 }
  0xf3   : > { %v502_v6 = vsub.f32 1.5, %v501_v2 }
  0xf4   : > { %v512_v9 = vsub.f32 1.5, %v511_v4 }
  0xf5   : > { %v503_v11 = vmul.f32 %v914_v59, %v502_v6 }
  0xf6   : > { %v513_v16 = vmul.f32 %v916_v19, %v512_v9 }
  0xf7   : > { %v507_v25 = vsel %vm506_vm8, %v914_v59, %v503_v11 }
  0xf8   : > { %v517_v26 = vsel %vm516_vm10, %v916_v19, %v513_v16  ;;  %v608_v27 = vmul.f32 %v600_v8, %v507_v25  ;;  %v568_v1 = vmul.f32 %v560_v15, %v507_v25 }
  0xf9   : > { %v609_v49 = vmul.f32 %v601_v24, %v517_v26  ;;  %v569_v28 = vmul.f32 %v561_v17, %v517_v26 }
  0xfa   : > { %v620_v50 = vmul.f32 %v1239_v29, %v608_v27  ;;  %v580_v21 = vmul.f32 %v1244_v30, %v568_v1 }
  0xfb   : > { %v621_v0 = vmul.f32 %v1239_v29, %v609_v49  ;;  %v581_v48 = vmul.f32 %v1244_v30, %v569_v28 }
  0xfc   : > { %v632_v12 = vadd.f32 %v1249_v7, %v620_v50  ;;  %v592_v55 = vadd.f32 %v1254_v35, %v580_v21 }
  0xfd   : > { %v633_v22 = vadd.f32 %v1249_v7, %v621_v0  ;;  %v593_v5 = vadd.f32 %v1254_v35, %v581_v48 }
  0xff   : > { %v644_v33 = vpack.c.bf16 %v633_v22, %v632_v12  ;;  %v639_v13 = vpack.c.bf16 %v593_v5, %v592_v55 }
 0x101   : > { %840 = vmatmul.msk.bf16.gmra.mxu0 %vm301_vm0, %v644_v33  ;;  %844 = vmatmul.msk.bf16.gmra.mxu1 %vm301_vm0, %v639_v13 }
 0x144   : > { %v683_v29 = vpop.f32.mrf.mxu2  ;;  %v727_v34 = vpop.f32.mrf.mxu3 }
 0x145   : > { %v728_v30 = vadd.f32 %v727_v34, %v683_v29 }
 0x147   : > { %741 = vst [vmem:[%s1339_s18 + $0x20] sm:$0xff] %v728_v30 }
 0x14c   : > { %v685_v7 = vpop.f32.mrf.mxu2  ;;  %v729_v35 = vpop.f32.mrf.mxu3 }
 0x14d   : > { %v730_v23 = vadd.f32 %v729_v35, %v685_v7 }
 0x14f   : > { %742 = vst [vmem:[%s1339_s18 + $0x28] sm:$0xff] %v730_v23 }
 0x155   : > { %v673_v38 = vpop.f32.mrf.mxu0  ;;  %v717_v31 = vpop.f32.mrf.mxu1 }
 0x156   : > { %v718_v40 = vadd.f32 %v717_v31, %v673_v38 }
 0x158   : > { %737 = vst [vmem:[%s1339_s18] sm:$0xff] %v718_v40 }
 0x15d   : > { %v675_v37 = vpop.f32.mrf.mxu0  ;;  %v719_v63 = vpop.f32.mrf.mxu1 }
 0x15e   : > { %v720_v39 = vadd.f32 %v719_v63, %v675_v37 }
 0x160   : > { %738 = vst [vmem:[%s1339_s18 + $0x8] sm:$0xff] %v720_v39 }
 0x16d   : > { %v688_v41 = vpop.f32.mrf.mxu2 }
 0x16e   : > { %v732_v42 = vpop.f32.mrf.mxu3 }
 0x16f   : > { %v733_v43 = vadd.f32 %v732_v42, %v688_v41 }
 0x171   : > { %743 = vst [vmem:[%s1339_s18 + $0x30] sm:$0xff] %v733_v43 }
 0x175   : > { %v690_v44 = vpop.f32.mrf.mxu2 }
 0x176   : > { %v734_v46 = vpop.f32.mrf.mxu3 }
 0x177   : > { %v735_v14 = vadd.f32 %v734_v46, %v690_v44 }
 0x179   : > { %744 = vst [vmem:[%s1339_s18 + $0x38] sm:$0xff] %v735_v14 }
 0x17e   : > { %v678_v51 = vpop.f32.mrf.mxu0  ;;  %v722_v47 = vpop.f32.mrf.mxu1 }
 0x17f   : > { %v723_v52 = vadd.f32 %v722_v47, %v678_v51 }
 0x181   : > { %739 = vst [vmem:[%s1339_s18 + $0x10] sm:$0xff] %v723_v52 }
 0x186   : > { %v680_v36 = vpop.f32.mrf.mxu0  ;;  %v724_v53 = vpop.f32.mrf.mxu1 }
 0x187   : > { %v725_v18 = vadd.f32 %v724_v53, %v680_v36 }
 0x189   : > { %740 = vst [vmem:[%s1339_s18 + $0x18] sm:$0xff] %v725_v18 }
 0x18a   : > { %944 = shalt.err (!%p941_p3)
}
 0x18b   : > { %s981_s16 = smov 128   ;;  %s982_s18 = smov 8  }
 0x18c   : > { %856 = dma.vmem_to_hbm [thread:$0]  (%p1061_p5), %s759_s23, 1024, %s761_s29, %s746_s8, %s981_s16, %s981_s16, %s982_s18  }
 0x18d PF: > { %p862_p4 = scmp.ge.s32.totalorder %s979_s27, 2  ;;  %s775_s20 = sand.u32 1, %s967_s24  }
 0x18e   : > { %s776_s21 = scalar_lea.sflag [#allocation3], %s775_s20 }
 0x18f   : > { %p859_p7 = pnand %p862_p4, %p1065_p6 }
 0x191   : > { %p860_p8 = pneg %p859_p7 }
 0x193   : > { %962 = dma.done.wait (%p860_p8), %s776_s21, 1024  }
 0x194   : > { %964 = vsyncadd (%p860_p8), %s776_s21, 4294966272  ;;  %p17_p9 = scmp.ge.s32.totalorder %s1048_s30, 4   ;;  %s1393_s24 = smov %s971_s25 }
 0x195   : > { %s1394_s25 = smov %s975_s26  ;;  %s1395_s26 = smov %s1059_s10 }
 0x196   : > { %s1396_s27 = smov %s1048_s30  ;;  %19 = sbr.rel (!%p17_p9) target bundleno = 3 (0x3), region = 84 }
 0x19b   :  { %782 = vsyncpa [#allocation3], 1 }
 0x19c   :  { %784 = vsyncpa [#allocation3 + $0x1], 1 }

</bundles_post_ra>
